<compile_context>
chip_gen: v7x
topology: tpu7x:2x2x1
jax: 0.10.0
libtpu: 0.0.40
codegen_flags: <defaults>
</compile_context>

<pallas_src>
import functools

import jax
import jax.numpy as jnp
from jax.experimental import pallas as pl
from jax.experimental.pallas import tpu as pltpu

EPS = 1e-5

# Packed small-vector slab: row layout (all f32, each row lane-padded to VEC_W).
ROW_BP, ROW_BM, ROW_BG1, ROW_WG2, ROW_BOUT, ROW_LNG, ROW_LNB, ROW_BG2 = range(8)
ROW_LAYER_BASE = 8
ROWS_PER_LAYER = 7  # bvo, bf1, bf2, ln1g, ln1b, ln2g, ln2b
L_BVO, L_BF1, L_BF2, L_LN1G, L_LN1B, L_LN2G, L_LN2B = range(ROWS_PER_LAYER)


def _layernorm(x, gamma, beta):
    mu = jnp.mean(x, axis=-1, keepdims=True)
    var = jnp.mean((x - mu) ** 2, axis=-1, keepdims=True)
    return (x - mu) * jax.lax.rsqrt(var + EPS) * gamma + beta


def gated_cross_attention_kernel(
    num_layers, embed_dim, ff_dim, gate_dim,
    # inputs
    p_ref, m_ref,
    wp_ref, wm_ref, wvo_ref, wf1_ref, wf2_ref, wg1p_ref, wg1m_ref, wout_ref,
    vec_ref,
    # output
    out_ref,
):
    f32 = jnp.float32
    bf16 = jnp.bfloat16
    E, F, G = embed_dim, ff_dim, gate_dim

    def vrow(r, n):
        # static row + static lane slice into the packed parameter slab -> (1, n) f32
        return vec_ref[r:r + 1, :n]

    def lrow(l, which, n):
        return vrow(ROW_LAYER_BASE + ROWS_PER_LAYER * l + which, n)

    p = p_ref[...].astype(bf16)
    m = m_ref[...].astype(bf16)

    # Input projections (protein_dim / molecule_dim -> embed_dim); bf16 MXU, f32 acc.
    p_e = jnp.dot(p, wp_ref[...], preferred_element_type=f32) + vrow(ROW_BP, E)
    m_e = jnp.dot(m, wm_ref[...], preferred_element_type=f32) + vrow(ROW_BM, E)
    p_e_bf = p_e.astype(bf16)   # cast once; reused by transformer input and gate matmul
    m_e_bf = m_e.astype(bf16)

    # Transformer encoder stack on the (length-1) protein "sequence".
    # seq_len == 1 => softmax over one key is exactly 1.0 => context == value,
    # so the per-layer attention collapses to a single folded linear (wvo/bvo).
    x = p_e
    x_bf = p_e_bf
    for l in range(num_layers):
        attn = jnp.dot(x_bf, wvo_ref[l], preferred_element_type=f32) + lrow(l, L_BVO, E)
        x = _layernorm(x + attn, lrow(l, L_LN1G, E), lrow(l, L_LN1B, E))

        h = jnp.dot(x.astype(bf16), wf1_ref[l], preferred_element_type=f32) + lrow(l, L_BF1, F)
        h = jnp.maximum(h, 0.0)
        ff = jnp.dot(h.astype(bf16), wf2_ref[l], preferred_element_type=f32) + lrow(l, L_BF2, E)
        x = _layernorm(x + ff, lrow(l, L_LN2G, E), lrow(l, L_LN2B, E))
        if l + 1 < num_layers:
            x_bf = x.astype(bf16)

    # Gate network: Linear(2E,512) (concat pre-split) -> ReLU -> [BN folded] -> Sigmoid.
    h = (jnp.dot(p_e_bf, wg1p_ref[...], preferred_element_type=f32)
         + jnp.dot(m_e_bf, wg1m_ref[...], preferred_element_type=f32)
         + vrow(ROW_BG1, G))
    h = jnp.maximum(h, 0.0)
    # BN affine already folded into wg2'/bg2' (exact: BN follows the ReLU).
    g_logit = jnp.sum(h * vrow(ROW_WG2, G), axis=-1, keepdims=True) + vrow(ROW_BG2, 1)
    g = jax.nn.sigmoid(g_logit)  # [B, 1]

    fused = p_e + g * (x - p_e)  # == g*x + (1-g)*p_e

    # output_proj: Linear(E, E) -> LayerNorm(E) -> ReLU
    out = jnp.dot(fused.astype(bf16), wout_ref[...], preferred_element_type=f32) + vrow(ROW_BOUT, E)
    out = _layernorm(out, vrow(ROW_LNG, E), vrow(ROW_LNB, E))
    out_ref[...] = jnp.maximum(out, 0.0).astype(out_ref.dtype)


def gated_cross_attention(p_feat, m_feat, params, *, num_layers, embed_dim, num_heads,
                          tile_b=None):
    B = p_feat.shape[0]
    E = embed_dim
    F = params["wf1"].shape[-1]
    G = params["wg1"].shape[-1]
    f32, bf16 = jnp.float32, jnp.bfloat16

    # Whole batch in one grid step by default (per-step overhead dominates this small
    # kernel).  If overridden (e.g. B//2 to use both TCs on v7x), clamp to a divisor.
    if tile_b is None:
        tile_b = B
    else:
        tile_b = max(1, min(int(tile_b), B))
        while B % tile_b:
            tile_b -= 1

    # ---- wrapper-side weight preprocessing (exact math in f32, once per call) ----
    # Fold attention value+output projections: (x @ wv) @ wo == x @ (wv @ wo).
    wvo = jnp.einsum("lij,ljk->lik", params["wv"], params["wo"]).astype(bf16)
    bvo = jnp.einsum("lij,ljk->lik", params["bv"], params["wo"]) + params["bo"]  # (L,1,E)

    # Fold eval-mode BatchNorm1d (follows the ReLU) into the 512->1 gate linear.
    inv = params["bng"] * jax.lax.rsqrt(params["bnv"] + EPS)                      # (1,G)
    wg2f = params["wg2"] * inv                                                    # (1,G)
    bg2f = params["bg2"] + jnp.sum(params["wg2"] * (params["bnb"] - params["bnm"] * inv),
                                   axis=-1, keepdims=True)                        # (1,1)

    # ---- pack every small f32 vector into one lane-padded slab (single DMA) ----
    VEC_W = ((max(E, F, G, 1) + 127) // 128) * 128

    def row(v):
        v = jnp.reshape(v, (-1,)).astype(f32)
        return jnp.pad(v, (0, VEC_W - v.shape[0]))

    rows = [row(params["bp"]), row(params["bm"]), row(params["bg1"]), row(wg2f),
            row(params["bout"]), row(params["lng"]), row(params["lnb"]), row(bg2f)]
    for l in range(num_layers):
        rows += [row(bvo[l]), row(params["bf1"][l]), row(params["bf2"][l]),
                 row(params["ln1g"][l]), row(params["ln1b"][l]),
                 row(params["ln2g"][l]), row(params["ln2b"][l])]
    vec = jnp.stack(rows)
    pad_rows = (-vec.shape[0]) % 8
    if pad_rows:
        vec = jnp.pad(vec, ((0, pad_rows), (0, 0)))

    weights = [
        params["wp"].astype(bf16), params["wm"].astype(bf16),
        wvo,
        params["wf1"].astype(bf16), params["wf2"].astype(bf16),
        params["wg1"][:E].astype(bf16), params["wg1"][E:].astype(bf16),
        params["wout"].astype(bf16),
    ]

    def full_block(a):
        nd = a.ndim
        return pl.BlockSpec(a.shape, lambda i, _nd=nd: (0,) * _nd)

    in_specs = [
        pl.BlockSpec((tile_b, p_feat.shape[1]), lambda i: (i, 0)),
        pl.BlockSpec((tile_b, m_feat.shape[1]), lambda i: (i, 0)),
    ] + [full_block(a) for a in weights] + [full_block(vec)]

    out_specs = pl.BlockSpec((tile_b, E), lambda i: (i, 0))
    out_shape = jax.ShapeDtypeStruct((B, E), jnp.float32)

    # Advisory cost hint so XLA schedules this microsecond-scale custom call sensibly.
    flops = 2 * B * (p_feat.shape[1] * E + m_feat.shape[1] * E
                     + num_layers * (E * E + 2 * E * F) + 2 * E * G + G + E * E)
    bytes_accessed = (sum(int(a.size) * a.dtype.itemsize for a in (p_feat, m_feat, vec, *weights))
                      + B * E * 4)
    cost = pl.CostEstimate(flops=int(flops),
                           transcendentals=int(B * (2 * num_layers + 2)),
                           bytes_accessed=int(bytes_accessed))

    kernel = functools.partial(gated_cross_attention_kernel, num_layers, E, F, G)
    out = pl.pallas_call(
        kernel,
        out_shape=out_shape,
        grid_spec=pltpu.PrefetchScalarGridSpec(
            num_scalar_prefetch=0,
            grid=(B // tile_b,),
            in_specs=in_specs,
            out_specs=out_specs,
        ),
        compiler_params=pltpu.CompilerParams(
            dimension_semantics=("parallel",),
            vmem_limit_bytes=32 * 1024 * 1024,
        ),
        cost_estimate=cost,
    )(p_feat, m_feat, *weights, vec)

    # Length-1 softmax => attention weights identically 1.0; produced in the wrapper
    # (no narrow masked stores inside the kernel).
    all_attn_weights = [jnp.ones((B, num_heads, 1, 1), jnp.float32) for _ in range(num_layers)]
    return out, all_attn_weights


def init_params(key, *, E, F, L, Dp, Dm, G):
    keys = iter(jax.random.split(key, 128))

    def w(din, dout):
        return jax.random.normal(next(keys), (din, dout), jnp.float32) / jnp.sqrt(din)

    def b(dout):
        return jax.random.normal(next(keys), (1, dout), jnp.float32) * 0.02

    def wstack(din, dout):
        return jnp.stack([w(din, dout) for _ in range(L)])

    def bstack(dout):
        return jnp.stack([b(dout) for _ in range(L)])

    # wq/bq/wk/bk kept for structural fidelity with the PyTorch module even though
    # they are mathematically dead for a length-1 sequence (never fed to the kernel).
    return dict(
        wp=w(Dp, E), bp=b(E), wm=w(Dm, E), bm=b(E),
        wq=wstack(E, E), bq=bstack(E), wk=wstack(E, E), bk=bstack(E),
        wv=wstack(E, E), bv=bstack(E), wo=wstack(E, E), bo=bstack(E),
        wf1=wstack(E, F), bf1=bstack(F), wf2=wstack(F, E), bf2=bstack(E),
        ln1g=jnp.ones((L, 1, E), jnp.float32), ln1b=jnp.zeros((L, 1, E), jnp.float32),
        ln2g=jnp.ones((L, 1, E), jnp.float32), ln2b=jnp.zeros((L, 1, E), jnp.float32),
        wg1=w(2 * E, G), bg1=b(G),
        bng=jnp.ones((1, G), jnp.float32), bnb=jnp.zeros((1, G), jnp.float32),
        bnm=jnp.zeros((1, G), jnp.float32), bnv=jnp.ones((1, G), jnp.float32),
        wg2=jax.random.normal(next(keys), (1, G), jnp.float32) / jnp.sqrt(G), bg2=b(1),
        wout=w(E, E), bout=b(E),
        lng=jnp.ones((1, E), jnp.float32), lnb=jnp.zeros((1, E), jnp.float32),
    )


def reference_forward(p_feat, m_feat, P, *, num_layers):
    """Pure-JAX f32 reference for correctness check (same eval-mode semantics)."""
    def ln(x, g, b_):
        mu = jnp.mean(x, -1, keepdims=True)
        var = jnp.mean((x - mu) ** 2, -1, keepdims=True)
        return (x - mu) / jnp.sqrt(var + EPS) * g + b_

    p_e = p_feat @ P["wp"] + P["bp"][0]
    m_e = m_feat @ P["wm"] + P["bm"][0]
    x = p_e
    for l in range(num_layers):
        v = x @ P["wv"][l] + P["bv"][l][0]
        attn = v @ P["wo"][l] + P["bo"][l][0]
        x = ln(x + attn, P["ln1g"][l][0], P["ln1b"][l][0])
        h = jax.nn.relu(x @ P["wf1"][l] + P["bf1"][l][0])
        ff = h @ P["wf2"][l] + P["bf2"][l][0]
        x = ln(x + ff, P["ln2g"][l][0], P["ln2b"][l][0])
    gate_in = jnp.concatenate([p_e, m_e], axis=-1)
    h = jax.nn.relu(gate_in @ P["wg1"] + P["bg1"][0])
    h = (h - P["bnm"][0]) / jnp.sqrt(P["bnv"][0] + EPS) * P["bng"][0] + P["bnb"][0]
    g = jax.nn.sigmoid(h @ P["wg2"][0][:, None] + P["bg2"][0])
    fused = g * x + (1.0 - g) * p_e
    out = fused @ P["wout"] + P["bout"][0]
    out = ln(out, P["lng"][0], P["lnb"][0])
    return jax.nn.relu(out)


if __name__ == "__main__":
    # Small shapes consistent with the module's forward: features are [B, D] vectors.
    B = 16            # batch
    E = 32            # embed_dim
    H = 4             # num_heads
    F = 64            # ff_dim
    L = 2             # num_layers
    Dp, Dm = 48, 40   # protein_dim, molecule_dim (!= embed_dim -> projections active)
    G = 512           # gate_net hidden size (hard-coded in the module)

    key = jax.random.PRNGKey(0)
    kp, km, kw = jax.random.split(key, 3)
    protein_features = jax.random.normal(kp, (B, Dp), jnp.float32)
    molecule_features = jax.random.normal(km, (B, Dm), jnp.float32)
    params = init_params(kw, E=E, F=F, L=L, Dp=Dp, Dm=Dm, G=G)

    out, all_attn_weights = gated_cross_attention(
        protein_features, molecule_features, params,
        num_layers=L, embed_dim=E, num_heads=H,  # tile_b defaults to B -> single grid step
    )
    out = jax.block_until_ready(out)

    ref = reference_forward(protein_features, molecule_features, params, num_layers=L)
    assert out.shape == (B, E)
    assert len(all_attn_weights) == L and all_attn_weights[0].shape == (B, H, 1, 1)
    assert bool(jnp.allclose(out, ref, atol=5e-2, rtol=5e-2)), "kernel output mismatch vs reference"
    assert bool(jnp.all(all_attn_weights[0] == 1.0)), "length-1 softmax weights must be 1"

    print("KERNEL_OK")
</pallas_src>

<mosaic_0001>
module attributes {stable_mosaic.version = 11 : i64} {
  func.func @gated_cross_attention_kernel(%arg0: i32, %arg1: memref<16x48xf32, #tpu.memory_space<vmem>>, %arg2: memref<16x40xf32, #tpu.memory_space<vmem>>, %arg3: memref<48x32xbf16, #tpu.memory_space<vmem>>, %arg4: memref<40x32xbf16, #tpu.memory_space<vmem>>, %arg5: memref<2x32x32xbf16, #tpu.memory_space<vmem>>, %arg6: memref<2x32x64xbf16, #tpu.memory_space<vmem>>, %arg7: memref<2x64x32xbf16, #tpu.memory_space<vmem>>, %arg8: memref<32x512xbf16, #tpu.memory_space<vmem>>, %arg9: memref<32x512xbf16, #tpu.memory_space<vmem>>, %arg10: memref<32x32xbf16, #tpu.memory_space<vmem>>, %arg11: memref<24x512xf32, #tpu.memory_space<vmem>>, %arg12: memref<16x32xf32, #tpu.memory_space<vmem>>) attributes {dimension_semantics = [#tpu.dimension_semantics<parallel>], iteration_bounds = array<i64: 1>, scalar_prefetch = 0 : i64, scratch_operands = 0 : i64, tpu.core_type = #tpu.core_type<tc>, window_params = [{transform_indices = @transform_0, window_bounds = array<i64: 16, 48>}, {transform_indices = @transform_1, window_bounds = array<i64: 16, 40>}, {pipeline_mode = #tpu.pipeline_mode<synchronous>, transform_indices = @transform_2, window_bounds = array<i64: 48, 32>}, {pipeline_mode = #tpu.pipeline_mode<synchronous>, transform_indices = @transform_3, window_bounds = array<i64: 40, 32>}, {pipeline_mode = #tpu.pipeline_mode<synchronous>, transform_indices = @transform_4, window_bounds = array<i64: 2, 32, 32>}, {pipeline_mode = #tpu.pipeline_mode<synchronous>, transform_indices = @transform_5, window_bounds = array<i64: 2, 32, 64>}, {pipeline_mode = #tpu.pipeline_mode<synchronous>, transform_indices = @transform_6, window_bounds = array<i64: 2, 64, 32>}, {pipeline_mode = #tpu.pipeline_mode<synchronous>, transform_indices = @transform_7, window_bounds = array<i64: 32, 512>}, {pipeline_mode = #tpu.pipeline_mode<synchronous>, transform_indices = @transform_8, window_bounds = array<i64: 32, 512>}, {pipeline_mode = #tpu.pipeline_mode<synchronous>, transform_indices = @transform_9, window_bounds = array<i64: 32, 32>}, {pipeline_mode = #tpu.pipeline_mode<synchronous>, transform_indices = @transform_10, window_bounds = array<i64: 24, 512>}, {transform_indices = @transform_11, window_bounds = array<i64: 16, 32>}]} {
    %c0 = arith.constant 0 : index
    %c0_0 = arith.constant 0 : index
    %0 = vector.load %arg1[%c0, %c0_0] : memref<16x48xf32, #tpu.memory_space<vmem>>, vector<16x48xf32>
    %1 = arith.truncf %0 : vector<16x48xf32> to vector<16x48xbf16>
    %c0_1 = arith.constant 0 : index
    %c0_2 = arith.constant 0 : index
    %2 = vector.load %arg2[%c0_1, %c0_2] : memref<16x40xf32, #tpu.memory_space<vmem>>, vector<16x40xf32>
    %3 = arith.truncf %2 : vector<16x40xf32> to vector<16x40xbf16>
    %c0_3 = arith.constant 0 : index
    %c0_4 = arith.constant 0 : index
    %4 = vector.load %arg3[%c0_3, %c0_4] : memref<48x32xbf16, #tpu.memory_space<vmem>>, vector<48x32xbf16>
    %cst = arith.constant dense<0.000000e+00> : vector<16x32xf32>
    %5 = tpu.matmul %1, %4, %cst {dimension_numbers = #tpu.dot_dimension_numbers<[1], [0], [0], [1], [0, 0, 1, 1], [], []>} : vector<16x48xbf16>, vector<48x32xbf16>, vector<16x32xf32> -> vector<16x32xf32>
    %c0_5 = arith.constant 0 : index
    %c0_6 = arith.constant 0 : index
    %6 = vector.load %arg11[%c0_5, %c0_6] : memref<24x512xf32, #tpu.memory_space<vmem>>, vector<1x32xf32>
    %7 = vector.broadcast %6 : vector<1x32xf32> to vector<16x32xf32>
    %8 = arith.addf %5, %7 : vector<16x32xf32>
    %c0_7 = arith.constant 0 : index
    %c0_8 = arith.constant 0 : index
    %9 = vector.load %arg4[%c0_7, %c0_8] : memref<40x32xbf16, #tpu.memory_space<vmem>>, vector<40x32xbf16>
    %cst_9 = arith.constant dense<0.000000e+00> : vector<16x32xf32>
    %10 = tpu.matmul %3, %9, %cst_9 {dimension_numbers = #tpu.dot_dimension_numbers<[1], [0], [0], [1], [0, 0, 1, 1], [], []>} : vector<16x40xbf16>, vector<40x32xbf16>, vector<16x32xf32> -> vector<16x32xf32>
    %c1 = arith.constant 1 : index
    %c0_10 = arith.constant 0 : index
    %11 = vector.load %arg11[%c1, %c0_10] : memref<24x512xf32, #tpu.memory_space<vmem>>, vector<1x32xf32>
    %12 = vector.broadcast %11 : vector<1x32xf32> to vector<16x32xf32>
    %13 = arith.addf %10, %12 : vector<16x32xf32>
    %14 = arith.truncf %8 : vector<16x32xf32> to vector<16x32xbf16>
    %15 = arith.truncf %13 : vector<16x32xf32> to vector<16x32xbf16>
    %c0_11 = arith.constant 0 : index
    %c0_12 = arith.constant 0 : index
    %c0_13 = arith.constant 0 : index
    %16 = vector.load %arg5[%c0_11, %c0_12, %c0_13] : memref<2x32x32xbf16, #tpu.memory_space<vmem>>, vector<1x32x32xbf16>
    %17 = vector.shape_cast %16 : vector<1x32x32xbf16> to vector<32x32xbf16>
    %cst_14 = arith.constant dense<0.000000e+00> : vector<16x32xf32>
    %18 = tpu.matmul %14, %17, %cst_14 {dimension_numbers = #tpu.dot_dimension_numbers<[1], [0], [0], [1], [0, 0, 1, 1], [], []>} : vector<16x32xbf16>, vector<32x32xbf16>, vector<16x32xf32> -> vector<16x32xf32>
    %c8 = arith.constant 8 : index
    %c0_15 = arith.constant 0 : index
    %19 = vector.load %arg11[%c8, %c0_15] : memref<24x512xf32, #tpu.memory_space<vmem>>, vector<1x32xf32>
    %20 = vector.broadcast %19 : vector<1x32xf32> to vector<16x32xf32>
    %21 = arith.addf %18, %20 : vector<16x32xf32>
    %22 = arith.addf %8, %21 : vector<16x32xf32>
    %c11 = arith.constant 11 : index
    %c0_16 = arith.constant 0 : index
    %23 = vector.load %arg11[%c11, %c0_16] : memref<24x512xf32, #tpu.memory_space<vmem>>, vector<1x32xf32>
    %c12 = arith.constant 12 : index
    %c0_17 = arith.constant 0 : index
    %24 = vector.load %arg11[%c12, %c0_17] : memref<24x512xf32, #tpu.memory_space<vmem>>, vector<1x32xf32>
    %cst_18 = arith.constant dense<0.000000e+00> : vector<16xf32>
    %25 = vector.multi_reduction <add>, %22, %cst_18 [1] : vector<16x32xf32> to vector<16xf32>
    %26 = vector.shape_cast %25 : vector<16xf32> to vector<16x1xf32>
    %cst_19 = arith.constant 3.200000e+01 : f32
    %27 = vector.broadcast %cst_19 : f32 to vector<16x1xf32>
    %28 = arith.divf %26, %27 : vector<16x1xf32>
    %29 = vector.broadcast %28 : vector<16x1xf32> to vector<16x32xf32>
    %30 = arith.subf %22, %29 : vector<16x32xf32>
    %31 = arith.mulf %30, %30 : vector<16x32xf32>
    %cst_20 = arith.constant dense<0.000000e+00> : vector<16xf32>
    %32 = vector.multi_reduction <add>, %31, %cst_20 [1] : vector<16x32xf32> to vector<16xf32>
    %33 = vector.shape_cast %32 : vector<16xf32> to vector<16x1xf32>
    %cst_21 = arith.constant 3.200000e+01 : f32
    %34 = vector.broadcast %cst_21 : f32 to vector<16x1xf32>
    %35 = arith.divf %33, %34 : vector<16x1xf32>
    %36 = vector.broadcast %28 : vector<16x1xf32> to vector<16x32xf32>
    %37 = arith.subf %22, %36 : vector<16x32xf32>
    %cst_22 = arith.constant 9.99999974E-6 : f32
    %38 = vector.broadcast %cst_22 : f32 to vector<16x1xf32>
    %39 = arith.addf %35, %38 : vector<16x1xf32>
    %40 = math.rsqrt %39 : vector<16x1xf32>
    %41 = vector.broadcast %40 : vector<16x1xf32> to vector<16x32xf32>
    %42 = arith.mulf %37, %41 : vector<16x32xf32>
    %43 = vector.broadcast %23 : vector<1x32xf32> to vector<16x32xf32>
    %44 = arith.mulf %42, %43 : vector<16x32xf32>
    %45 = vector.broadcast %24 : vector<1x32xf32> to vector<16x32xf32>
    %46 = arith.addf %44, %45 : vector<16x32xf32>
    %47 = arith.truncf %46 : vector<16x32xf32> to vector<16x32xbf16>
    %c0_23 = arith.constant 0 : index
    %c0_24 = arith.constant 0 : index
    %c0_25 = arith.constant 0 : index
    %48 = vector.load %arg6[%c0_23, %c0_24, %c0_25] : memref<2x32x64xbf16, #tpu.memory_space<vmem>>, vector<1x32x64xbf16>
    %49 = vector.shape_cast %48 : vector<1x32x64xbf16> to vector<32x64xbf16>
    %cst_26 = arith.constant dense<0.000000e+00> : vector<16x64xf32>
    %50 = tpu.matmul %47, %49, %cst_26 {dimension_numbers = #tpu.dot_dimension_numbers<[1], [0], [0], [1], [0, 0, 1, 1], [], []>} : vector<16x32xbf16>, vector<32x64xbf16>, vector<16x64xf32> -> vector<16x64xf32>
    %c9 = arith.constant 9 : index
    %c0_27 = arith.constant 0 : index
    %51 = vector.load %arg11[%c9, %c0_27] : memref<24x512xf32, #tpu.memory_space<vmem>>, vector<1x64xf32>
    %52 = vector.broadcast %51 : vector<1x64xf32> to vector<16x64xf32>
    %53 = arith.addf %50, %52 : vector<16x64xf32>
    %cst_28 = arith.constant 0.000000e+00 : f32
    %54 = vector.broadcast %cst_28 : f32 to vector<16x64xf32>
    %55 = arith.maximumf %53, %54 : vector<16x64xf32>
    %56 = arith.truncf %55 : vector<16x64xf32> to vector<16x64xbf16>
    %c0_29 = arith.constant 0 : index
    %c0_30 = arith.constant 0 : index
    %c0_31 = arith.constant 0 : index
    %57 = vector.load %arg7[%c0_29, %c0_30, %c0_31] : memref<2x64x32xbf16, #tpu.memory_space<vmem>>, vector<1x64x32xbf16>
    %58 = vector.shape_cast %57 : vector<1x64x32xbf16> to vector<64x32xbf16>
    %cst_32 = arith.constant dense<0.000000e+00> : vector<16x32xf32>
    %59 = tpu.matmul %56, %58, %cst_32 {dimension_numbers = #tpu.dot_dimension_numbers<[1], [0], [0], [1], [0, 0, 1, 1], [], []>} : vector<16x64xbf16>, vector<64x32xbf16>, vector<16x32xf32> -> vector<16x32xf32>
    %c10 = arith.constant 10 : index
    %c0_33 = arith.constant 0 : index
    %60 = vector.load %arg11[%c10, %c0_33] : memref<24x512xf32, #tpu.memory_space<vmem>>, vector<1x32xf32>
    %61 = vector.broadcast %60 : vector<1x32xf32> to vector<16x32xf32>
    %62 = arith.addf %59, %61 : vector<16x32xf32>
    %63 = arith.addf %46, %62 : vector<16x32xf32>
    %c13 = arith.constant 13 : index
    %c0_34 = arith.constant 0 : index
    %64 = vector.load %arg11[%c13, %c0_34] : memref<24x512xf32, #tpu.memory_space<vmem>>, vector<1x32xf32>
    %c14 = arith.constant 14 : index
    %c0_35 = arith.constant 0 : index
    %65 = vector.load %arg11[%c14, %c0_35] : memref<24x512xf32, #tpu.memory_space<vmem>>, vector<1x32xf32>
    %cst_36 = arith.constant dense<0.000000e+00> : vector<16xf32>
    %66 = vector.multi_reduction <add>, %63, %cst_36 [1] : vector<16x32xf32> to vector<16xf32>
    %67 = vector.shape_cast %66 : vector<16xf32> to vector<16x1xf32>
    %cst_37 = arith.constant 3.200000e+01 : f32
    %68 = vector.broadcast %cst_37 : f32 to vector<16x1xf32>
    %69 = arith.divf %67, %68 : vector<16x1xf32>
    %70 = vector.broadcast %69 : vector<16x1xf32> to vector<16x32xf32>
    %71 = arith.subf %63, %70 : vector<16x32xf32>
    %72 = arith.mulf %71, %71 : vector<16x32xf32>
    %cst_38 = arith.constant dense<0.000000e+00> : vector<16xf32>
    %73 = vector.multi_reduction <add>, %72, %cst_38 [1] : vector<16x32xf32> to vector<16xf32>
    %74 = vector.shape_cast %73 : vector<16xf32> to vector<16x1xf32>
    %cst_39 = arith.constant 3.200000e+01 : f32
    %75 = vector.broadcast %cst_39 : f32 to vector<16x1xf32>
    %76 = arith.divf %74, %75 : vector<16x1xf32>
    %77 = vector.broadcast %69 : vector<16x1xf32> to vector<16x32xf32>
    %78 = arith.subf %63, %77 : vector<16x32xf32>
    %cst_40 = arith.constant 9.99999974E-6 : f32
    %79 = vector.broadcast %cst_40 : f32 to vector<16x1xf32>
    %80 = arith.addf %76, %79 : vector<16x1xf32>
    %81 = math.rsqrt %80 : vector<16x1xf32>
    %82 = vector.broadcast %81 : vector<16x1xf32> to vector<16x32xf32>
    %83 = arith.mulf %78, %82 : vector<16x32xf32>
    %84 = vector.broadcast %64 : vector<1x32xf32> to vector<16x32xf32>
    %85 = arith.mulf %83, %84 : vector<16x32xf32>
    %86 = vector.broadcast %65 : vector<1x32xf32> to vector<16x32xf32>
    %87 = arith.addf %85, %86 : vector<16x32xf32>
    %88 = arith.truncf %87 : vector<16x32xf32> to vector<16x32xbf16>
    %c1_41 = arith.constant 1 : index
    %c0_42 = arith.constant 0 : index
    %c0_43 = arith.constant 0 : index
    %89 = vector.load %arg5[%c1_41, %c0_42, %c0_43] : memref<2x32x32xbf16, #tpu.memory_space<vmem>>, vector<1x32x32xbf16>
    %90 = vector.shape_cast %89 : vector<1x32x32xbf16> to vector<32x32xbf16>
    %cst_44 = arith.constant dense<0.000000e+00> : vector<16x32xf32>
    %91 = tpu.matmul %88, %90, %cst_44 {dimension_numbers = #tpu.dot_dimension_numbers<[1], [0], [0], [1], [0, 0, 1, 1], [], []>} : vector<16x32xbf16>, vector<32x32xbf16>, vector<16x32xf32> -> vector<16x32xf32>
    %c15 = arith.constant 15 : index
    %c0_45 = arith.constant 0 : index
    %92 = vector.load %arg11[%c15, %c0_45] : memref<24x512xf32, #tpu.memory_space<vmem>>, vector<1x32xf32>
    %93 = vector.broadcast %92 : vector<1x32xf32> to vector<16x32xf32>
    %94 = arith.addf %91, %93 : vector<16x32xf32>
    %95 = arith.addf %87, %94 : vector<16x32xf32>
    %c18 = arith.constant 18 : index
    %c0_46 = arith.constant 0 : index
    %96 = vector.load %arg11[%c18, %c0_46] : memref<24x512xf32, #tpu.memory_space<vmem>>, vector<1x32xf32>
    %c19 = arith.constant 19 : index
    %c0_47 = arith.constant 0 : index
    %97 = vector.load %arg11[%c19, %c0_47] : memref<24x512xf32, #tpu.memory_space<vmem>>, vector<1x32xf32>
    %cst_48 = arith.constant dense<0.000000e+00> : vector<16xf32>
    %98 = vector.multi_reduction <add>, %95, %cst_48 [1] : vector<16x32xf32> to vector<16xf32>
    %99 = vector.shape_cast %98 : vector<16xf32> to vector<16x1xf32>
    %cst_49 = arith.constant 3.200000e+01 : f32
    %100 = vector.broadcast %cst_49 : f32 to vector<16x1xf32>
    %101 = arith.divf %99, %100 : vector<16x1xf32>
    %102 = vector.broadcast %101 : vector<16x1xf32> to vector<16x32xf32>
    %103 = arith.subf %95, %102 : vector<16x32xf32>
    %104 = arith.mulf %103, %103 : vector<16x32xf32>
    %cst_50 = arith.constant dense<0.000000e+00> : vector<16xf32>
    %105 = vector.multi_reduction <add>, %104, %cst_50 [1] : vector<16x32xf32> to vector<16xf32>
    %106 = vector.shape_cast %105 : vector<16xf32> to vector<16x1xf32>
    %cst_51 = arith.constant 3.200000e+01 : f32
    %107 = vector.broadcast %cst_51 : f32 to vector<16x1xf32>
    %108 = arith.divf %106, %107 : vector<16x1xf32>
    %109 = vector.broadcast %101 : vector<16x1xf32> to vector<16x32xf32>
    %110 = arith.subf %95, %109 : vector<16x32xf32>
    %cst_52 = arith.constant 9.99999974E-6 : f32
    %111 = vector.broadcast %cst_52 : f32 to vector<16x1xf32>
    %112 = arith.addf %108, %111 : vector<16x1xf32>
    %113 = math.rsqrt %112 : vector<16x1xf32>
    %114 = vector.broadcast %113 : vector<16x1xf32> to vector<16x32xf32>
    %115 = arith.mulf %110, %114 : vector<16x32xf32>
    %116 = vector.broadcast %96 : vector<1x32xf32> to vector<16x32xf32>
    %117 = arith.mulf %115, %116 : vector<16x32xf32>
    %118 = vector.broadcast %97 : vector<1x32xf32> to vector<16x32xf32>
    %119 = arith.addf %117, %118 : vector<16x32xf32>
    %120 = arith.truncf %119 : vector<16x32xf32> to vector<16x32xbf16>
    %c1_53 = arith.constant 1 : index
    %c0_54 = arith.constant 0 : index
    %c0_55 = arith.constant 0 : index
    %121 = vector.load %arg6[%c1_53, %c0_54, %c0_55] : memref<2x32x64xbf16, #tpu.memory_space<vmem>>, vector<1x32x64xbf16>
    %122 = vector.shape_cast %121 : vector<1x32x64xbf16> to vector<32x64xbf16>
    %cst_56 = arith.constant dense<0.000000e+00> : vector<16x64xf32>
    %123 = tpu.matmul %120, %122, %cst_56 {dimension_numbers = #tpu.dot_dimension_numbers<[1], [0], [0], [1], [0, 0, 1, 1], [], []>} : vector<16x32xbf16>, vector<32x64xbf16>, vector<16x64xf32> -> vector<16x64xf32>
    %c16 = arith.constant 16 : index
    %c0_57 = arith.constant 0 : index
    %124 = vector.load %arg11[%c16, %c0_57] : memref<24x512xf32, #tpu.memory_space<vmem>>, vector<1x64xf32>
    %125 = vector.broadcast %124 : vector<1x64xf32> to vector<16x64xf32>
    %126 = arith.addf %123, %125 : vector<16x64xf32>
    %cst_58 = arith.constant 0.000000e+00 : f32
    %127 = vector.broadcast %cst_58 : f32 to vector<16x64xf32>
    %128 = arith.maximumf %126, %127 : vector<16x64xf32>
    %129 = arith.truncf %128 : vector<16x64xf32> to vector<16x64xbf16>
    %c1_59 = arith.constant 1 : index
    %c0_60 = arith.constant 0 : index
    %c0_61 = arith.constant 0 : index
    %130 = vector.load %arg7[%c1_59, %c0_60, %c0_61] : memref<2x64x32xbf16, #tpu.memory_space<vmem>>, vector<1x64x32xbf16>
    %131 = vector.shape_cast %130 : vector<1x64x32xbf16> to vector<64x32xbf16>
    %cst_62 = arith.constant dense<0.000000e+00> : vector<16x32xf32>
    %132 = tpu.matmul %129, %131, %cst_62 {dimension_numbers = #tpu.dot_dimension_numbers<[1], [0], [0], [1], [0, 0, 1, 1], [], []>} : vector<16x64xbf16>, vector<64x32xbf16>, vector<16x32xf32> -> vector<16x32xf32>
    %c17 = arith.constant 17 : index
    %c0_63 = arith.constant 0 : index
    %133 = vector.load %arg11[%c17, %c0_63] : memref<24x512xf32, #tpu.memory_space<vmem>>, vector<1x32xf32>
    %134 = vector.broadcast %133 : vector<1x32xf32> to vector<16x32xf32>
    %135 = arith.addf %132, %134 : vector<16x32xf32>
    %136 = arith.addf %119, %135 : vector<16x32xf32>
    %c20 = arith.constant 20 : index
    %c0_64 = arith.constant 0 : index
    %137 = vector.load %arg11[%c20, %c0_64] : memref<24x512xf32, #tpu.memory_space<vmem>>, vector<1x32xf32>
    %c21 = arith.constant 21 : index
    %c0_65 = arith.constant 0 : index
    %138 = vector.load %arg11[%c21, %c0_65] : memref<24x512xf32, #tpu.memory_space<vmem>>, vector<1x32xf32>
    %cst_66 = arith.constant dense<0.000000e+00> : vector<16xf32>
    %139 = vector.multi_reduction <add>, %136, %cst_66 [1] : vector<16x32xf32> to vector<16xf32>
    %140 = vector.shape_cast %139 : vector<16xf32> to vector<16x1xf32>
    %cst_67 = arith.constant 3.200000e+01 : f32
    %141 = vector.broadcast %cst_67 : f32 to vector<16x1xf32>
    %142 = arith.divf %140, %141 : vector<16x1xf32>
    %143 = vector.broadcast %142 : vector<16x1xf32> to vector<16x32xf32>
    %144 = arith.subf %136, %143 : vector<16x32xf32>
    %145 = arith.mulf %144, %144 : vector<16x32xf32>
    %cst_68 = arith.constant dense<0.000000e+00> : vector<16xf32>
    %146 = vector.multi_reduction <add>, %145, %cst_68 [1] : vector<16x32xf32> to vector<16xf32>
    %147 = vector.shape_cast %146 : vector<16xf32> to vector<16x1xf32>
    %cst_69 = arith.constant 3.200000e+01 : f32
    %148 = vector.broadcast %cst_69 : f32 to vector<16x1xf32>
    %149 = arith.divf %147, %148 : vector<16x1xf32>
    %150 = vector.broadcast %142 : vector<16x1xf32> to vector<16x32xf32>
    %151 = arith.subf %136, %150 : vector<16x32xf32>
    %cst_70 = arith.constant 9.99999974E-6 : f32
    %152 = vector.broadcast %cst_70 : f32 to vector<16x1xf32>
    %153 = arith.addf %149, %152 : vector<16x1xf32>
    %154 = math.rsqrt %153 : vector<16x1xf32>
    %155 = vector.broadcast %154 : vector<16x1xf32> to vector<16x32xf32>
    %156 = arith.mulf %151, %155 : vector<16x32xf32>
    %157 = vector.broadcast %137 : vector<1x32xf32> to vector<16x32xf32>
    %158 = arith.mulf %156, %157 : vector<16x32xf32>
    %159 = vector.broadcast %138 : vector<1x32xf32> to vector<16x32xf32>
    %160 = arith.addf %158, %159 : vector<16x32xf32>
    %c0_71 = arith.constant 0 : index
    %c0_72 = arith.constant 0 : index
    %161 = vector.load %arg8[%c0_71, %c0_72] : memref<32x512xbf16, #tpu.memory_space<vmem>>, vector<32x512xbf16>
    %cst_73 = arith.constant dense<0.000000e+00> : vector<16x512xf32>
    %162 = tpu.matmul %14, %161, %cst_73 {dimension_numbers = #tpu.dot_dimension_numbers<[1], [0], [0], [1], [0, 0, 1, 1], [], []>} : vector<16x32xbf16>, vector<32x512xbf16>, vector<16x512xf32> -> vector<16x512xf32>
    %c0_74 = arith.constant 0 : index
    %c0_75 = arith.constant 0 : index
    %163 = vector.load %arg9[%c0_74, %c0_75] : memref<32x512xbf16, #tpu.memory_space<vmem>>, vector<32x512xbf16>
    %cst_76 = arith.constant dense<0.000000e+00> : vector<16x512xf32>
    %164 = tpu.matmul %15, %163, %cst_76 {dimension_numbers = #tpu.dot_dimension_numbers<[1], [0], [0], [1], [0, 0, 1, 1], [], []>} : vector<16x32xbf16>, vector<32x512xbf16>, vector<16x512xf32> -> vector<16x512xf32>
    %165 = arith.addf %162, %164 : vector<16x512xf32>
    %c2 = arith.constant 2 : index
    %c0_77 = arith.constant 0 : index
    %166 = vector.load %arg11[%c2, %c0_77] : memref<24x512xf32, #tpu.memory_space<vmem>>, vector<1x512xf32>
    %167 = vector.broadcast %166 : vector<1x512xf32> to vector<16x512xf32>
    %168 = arith.addf %165, %167 : vector<16x512xf32>
    %cst_78 = arith.constant 0.000000e+00 : f32
    %169 = vector.broadcast %cst_78 : f32 to vector<16x512xf32>
    %170 = arith.maximumf %168, %169 : vector<16x512xf32>
    %c3 = arith.constant 3 : index
    %c0_79 = arith.constant 0 : index
    %171 = vector.load %arg11[%c3, %c0_79] : memref<24x512xf32, #tpu.memory_space<vmem>>, vector<1x512xf32>
    %172 = vector.broadcast %171 : vector<1x512xf32> to vector<16x512xf32>
    %173 = arith.mulf %170, %172 : vector<16x512xf32>
    %cst_80 = arith.constant dense<0.000000e+00> : vector<16xf32>
    %174 = vector.multi_reduction <add>, %173, %cst_80 [1] : vector<16x512xf32> to vector<16xf32>
    %175 = vector.shape_cast %174 : vector<16xf32> to vector<16x1xf32>
    %c7 = arith.constant 7 : index
    %c0_81 = arith.constant 0 : index
    %176 = vector.load %arg11[%c7, %c0_81] : memref<24x512xf32, #tpu.memory_space<vmem>>, vector<1x1xf32>
    %177 = vector.broadcast %176 : vector<1x1xf32> to vector<16x1xf32>
    %178 = arith.addf %175, %177 : vector<16x1xf32>
    %179 = arith.negf %178 : vector<16x1xf32>
    %180 = math.exp %179 : vector<16x1xf32>
    %cst_82 = arith.constant 1.000000e+00 : f32
    %181 = vector.broadcast %cst_82 : f32 to vector<16x1xf32>
    %182 = arith.addf %181, %180 : vector<16x1xf32>
    %183 = arith.divf %181, %182 : vector<16x1xf32>
    %184 = arith.subf %160, %8 : vector<16x32xf32>
    %185 = vector.broadcast %183 : vector<16x1xf32> to vector<16x32xf32>
    %186 = arith.mulf %185, %184 : vector<16x32xf32>
    %187 = arith.addf %8, %186 : vector<16x32xf32>
    %188 = arith.truncf %187 : vector<16x32xf32> to vector<16x32xbf16>
    %c0_83 = arith.constant 0 : index
    %c0_84 = arith.constant 0 : index
    %189 = vector.load %arg10[%c0_83, %c0_84] : memref<32x32xbf16, #tpu.memory_space<vmem>>, vector<32x32xbf16>
    %cst_85 = arith.constant dense<0.000000e+00> : vector<16x32xf32>
    %190 = tpu.matmul %188, %189, %cst_85 {dimension_numbers = #tpu.dot_dimension_numbers<[1], [0], [0], [1], [0, 0, 1, 1], [], []>} : vector<16x32xbf16>, vector<32x32xbf16>, vector<16x32xf32> -> vector<16x32xf32>
    %c4 = arith.constant 4 : index
    %c0_86 = arith.constant 0 : index
    %191 = vector.load %arg11[%c4, %c0_86] : memref<24x512xf32, #tpu.memory_space<vmem>>, vector<1x32xf32>
    %192 = vector.broadcast %191 : vector<1x32xf32> to vector<16x32xf32>
    %193 = arith.addf %190, %192 : vector<16x32xf32>
    %c5 = arith.constant 5 : index
    %c0_87 = arith.constant 0 : index
    %194 = vector.load %arg11[%c5, %c0_87] : memref<24x512xf32, #tpu.memory_space<vmem>>, vector<1x32xf32>
    %c6 = arith.constant 6 : index
    %c0_88 = arith.constant 0 : index
    %195 = vector.load %arg11[%c6, %c0_88] : memref<24x512xf32, #tpu.memory_space<vmem>>, vector<1x32xf32>
    %cst_89 = arith.constant dense<0.000000e+00> : vector<16xf32>
    %196 = vector.multi_reduction <add>, %193, %cst_89 [1] : vector<16x32xf32> to vector<16xf32>
    %197 = vector.shape_cast %196 : vector<16xf32> to vector<16x1xf32>
    %cst_90 = arith.constant 3.200000e+01 : f32
    %198 = vector.broadcast %cst_90 : f32 to vector<16x1xf32>
    %199 = arith.divf %197, %198 : vector<16x1xf32>
    %200 = vector.broadcast %199 : vector<16x1xf32> to vector<16x32xf32>
    %201 = arith.subf %193, %200 : vector<16x32xf32>
    %202 = arith.mulf %201, %201 : vector<16x32xf32>
    %cst_91 = arith.constant dense<0.000000e+00> : vector<16xf32>
    %203 = vector.multi_reduction <add>, %202, %cst_91 [1] : vector<16x32xf32> to vector<16xf32>
    %204 = vector.shape_cast %203 : vector<16xf32> to vector<16x1xf32>
    %cst_92 = arith.constant 3.200000e+01 : f32
    %205 = vector.broadcast %cst_92 : f32 to vector<16x1xf32>
    %206 = arith.divf %204, %205 : vector<16x1xf32>
    %207 = vector.broadcast %199 : vector<16x1xf32> to vector<16x32xf32>
    %208 = arith.subf %193, %207 : vector<16x32xf32>
    %cst_93 = arith.constant 9.99999974E-6 : f32
    %209 = vector.broadcast %cst_93 : f32 to vector<16x1xf32>
    %210 = arith.addf %206, %209 : vector<16x1xf32>
    %211 = math.rsqrt %210 : vector<16x1xf32>
    %212 = vector.broadcast %211 : vector<16x1xf32> to vector<16x32xf32>
    %213 = arith.mulf %208, %212 : vector<16x32xf32>
    %214 = vector.broadcast %194 : vector<1x32xf32> to vector<16x32xf32>
    %215 = arith.mulf %213, %214 : vector<16x32xf32>
    %216 = vector.broadcast %195 : vector<1x32xf32> to vector<16x32xf32>
    %217 = arith.addf %215, %216 : vector<16x32xf32>
    %cst_94 = arith.constant 0.000000e+00 : f32
    %218 = vector.broadcast %cst_94 : f32 to vector<16x32xf32>
    %219 = arith.maximumf %217, %218 : vector<16x32xf32>
    %c0_95 = arith.constant 0 : index
    %c0_96 = arith.constant 0 : index
    %220 = vector.load %arg12[%c0_95, %c0_96] : memref<16x32xf32, #tpu.memory_space<vmem>>, vector<16x32xf32>
    tpu.vector_store %arg12[%c0_95, %c0_96], %219 {strides = array<i32>} : memref<16x32xf32, #tpu.memory_space<vmem>>, vector<16x32xf32>,
    return
  }
  func.func @transform_0(%arg0: i32) -> (i32, i32) {
    %c0_i32 = arith.constant 0 : i32
    %c0_i32_0 = arith.constant 0 : i32
    return %arg0, %c0_i32 : i32, i32
  }
  func.func @transform_1(%arg0: i32) -> (i32, i32) {
    %c0_i32 = arith.constant 0 : i32
    %c0_i32_0 = arith.constant 0 : i32
    return %arg0, %c0_i32 : i32, i32
  }
  func.func @transform_2(%arg0: i32) -> (i32, i32) {
    %c0_i32 = arith.constant 0 : i32
    %c0_i32_0 = arith.constant 0 : i32
    %c0_i32_1 = arith.constant 0 : i32
    return %c0_i32, %c0_i32_0 : i32, i32
  }
  func.func @transform_3(%arg0: i32) -> (i32, i32) {
    %c0_i32 = arith.constant 0 : i32
    %c0_i32_0 = arith.constant 0 : i32
    %c0_i32_1 = arith.constant 0 : i32
    return %c0_i32, %c0_i32_0 : i32, i32
  }
  func.func @transform_4(%arg0: i32) -> (i32, i32, i32) {
    %c0_i32 = arith.constant 0 : i32
    %c0_i32_0 = arith.constant 0 : i32
    %c0_i32_1 = arith.constant 0 : i32
    %c0_i32_2 = arith.constant 0 : i32
    return %c0_i32, %c0_i32_0, %c0_i32_1 : i32, i32, i32
  }
  func.func @transform_5(%arg0: i32) -> (i32, i32, i32) {
    %c0_i32 = arith.constant 0 : i32
    %c0_i32_0 = arith.constant 0 : i32
    %c0_i32_1 = arith.constant 0 : i32
    %c0_i32_2 = arith.constant 0 : i32
    return %c0_i32, %c0_i32_0, %c0_i32_1 : i32, i32, i32
  }
  func.func @transform_6(%arg0: i32) -> (i32, i32, i32) {
    %c0_i32 = arith.constant 0 : i32
    %c0_i32_0 = arith.constant 0 : i32
    %c0_i32_1 = arith.constant 0 : i32
    %c0_i32_2 = arith.constant 0 : i32
    return %c0_i32, %c0_i32_0, %c0_i32_1 : i32, i32, i32
  }
  func.func @transform_7(%arg0: i32) -> (i32, i32) {
    %c0_i32 = arith.constant 0 : i32
    %c0_i32_0 = arith.constant 0 : i32
    %c0_i32_1 = arith.constant 0 : i32
    return %c0_i32, %c0_i32_0 : i32, i32
  }
  func.func @transform_8(%arg0: i32) -> (i32, i32) {
    %c0_i32 = arith.constant 0 : i32
    %c0_i32_0 = arith.constant 0 : i32
    %c0_i32_1 = arith.constant 0 : i32
    return %c0_i32, %c0_i32_0 : i32, i32
  }
  func.func @transform_9(%arg0: i32) -> (i32, i32) {
    %c0_i32 = arith.constant 0 : i32
    %c0_i32_0 = arith.constant 0 : i32
    %c0_i32_1 = arith.constant 0 : i32
    return %c0_i32, %c0_i32_0 : i32, i32
  }
  func.func @transform_10(%arg0: i32) -> (i32, i32) {
    %c0_i32 = arith.constant 0 : i32
    %c0_i32_0 = arith.constant 0 : i32
    %c0_i32_1 = arith.constant 0 : i32
    return %c0_i32, %c0_i32_0 : i32, i32
  }
  func.func @transform_11(%arg0: i32) -> (i32, i32) {
    %c0_i32 = arith.constant 0 : i32
    %c0_i32_0 = arith.constant 0 : i32
    return %arg0, %c0_i32 : i32, i32
  }
}

</mosaic_0001>

<bundles_post_ra>
// kernel: tpu_custom_call.1
= control target key start
LH: loop header
LB: loop body
LE: loop exit
PB: predicated region body
PF: predicated region fallthrough
CT: control target
= control target key end

     0   :  { %16 = vsyncpa [#allocation3], 0  ;;  %s2181_s0 = inlined_call_operand.hbm [shape: f32[16,48], index: 0, kind: input, shape index: {}]   ;;  %s2182_s1 = inlined_call_operand.hbm [shape: f32[16,40], index: 1, kind: input, shape index: {}]   ;;  %s2183_s2 = inlined_call_operand.vmem [shape: bf16[48,32], index: 2, kind: input, shape index: {}]   ;;  %s2184_s3 = inlined_call_operand.vmem [shape: bf16[40,32], index: 3, kind: input, shape index: {}]   ;;  %s2185_s4 = inlined_call_operand.hbm [shape: bf16[2,32,32], index: 4, kind: input, shape index: {}]   ;;  %s2186_s5 = inlined_call_operand.hbm [shape: bf16[2,32,64], index: 5, kind: input, shape index: {}]   ;;  %s2187_s6 = inlined_call_operand.vmem [shape: bf16[2,64,32], index: 6, kind: input, shape index: {}]   ;;  %s2188_s7 = inlined_call_operand.vmem [shape: bf16[32,512], index: 7, kind: input, shape index: {}]   ;;  %s2189_s8 = inlined_call_operand.hbm [shape: bf16[32,512], index: 8, kind: input, shape index: {}]   ;;  %s2190_s9 = inlined_call_operand.hbm [shape: bf16[32,32], index: 9, kind: input, shape index: {}]   ;;  %s2191_s10 = inlined_call_operand.vmem [shape: f32[24,512], index: 10, kind: input, shape index: {}]   ;;  %s2192_s11 = inlined_call_operand.hbm [shape: f32[16,32], index: 11, kind: output, shape index: {}]  }
   0x1   :  { %17 = vsyncpa [#allocation6], 0 }
   0x2   :  { %18 = vsyncpa [#allocation9], 0 }
   0x3   :  { %19 = vsyncpa [#allocation12], 0 }
   0x4   :  { %20 = vsyncpa [#allocation4], 0  ;;  %s1767_s17 = smov [#allocation5]   ;;  %s1603_s21 = scalar_lea.hbm %s2182_s1, 256 }
   0x5   :  { %s38_s18 = sshll.u32 %s1767_s17, 4  ;;  %p1604_p0 = scmp.ne.s32.totalorder %s2182_s1, %s1603_s21  ;;  %s39_s18 = int_to_ptr.vmem [resolvable:$true] %s38_s18 }
   0x6   :  { %p1607_p1 = scmp.lt.u32.totalorder %s1603_s21, %s2182_s1 }
   0x8   :  { %p1609_p2 = pnand %p1607_p1, %p1604_p0 }
   0xa   :  { %1612 = shalt.err (!%p1609_p2)
}
   0xb   :  { %s1613_s26 = scalar_lea.vmem %s39_s18, 256  ;;  %p1618_p4 = scmp.lt.s32.totalorder %s39_s18, %s39_s18 }
   0xc   :  { %p1614_p3 = scmp.ne.s32.totalorder %s39_s18, %s1613_s26  ;;  %p1619_p5 = scmp.lt.s32.totalorder %s1613_s26, %s1613_s26 }
   0xe   :  { %p1620_p6 = por %p1619_p5, %p1618_p4 }
  0x10   :  { %p1621_p7 = pnand %p1620_p6, %p1614_p3 }
  0x12   :  { %1624 = shalt.err (!%p1621_p7)
}
  0x13   :  { %s1768_s27 = smov 128   ;;  %s1769_s28 = smov 8  }
  0x14   :  { %44 = dma.hbm_to_vmem [thread:$0]  %s2182_s1, 256, %s39_s18, [#allocation6], %s1768_s27, %s1768_s27, %s1769_s28  }
  0x15   :  { %s1770_s12 = smov [#allocation8]   ;;  %s1771_s14 = smov [#allocation2]  }
  0x16   :  { %s66_s13 = sshll.u32 %s1770_s12, 4  ;;  %s26_s15 = sshll.u32 %s1771_s14, 4  ;;  %s67_s13 = int_to_ptr.vmem [resolvable:$true] %s66_s13  ;;  %s27_s15 = int_to_ptr.vmem [resolvable:$true] %s26_s15 }
  0x17   :  { %s1625_s19 = scalar_lea.hbm %s2186_s5, 512 }
  0x18   :  { %p1626_p8 = scmp.ne.s32.totalorder %s2186_s5, %s1625_s19  ;;  %p1629_p9 = scmp.lt.u32.totalorder %s1625_s19, %s2186_s5 }
  0x1a   :  { %p1631_p10 = pnand %p1629_p9, %p1626_p8 }
  0x1c   :  { %1634 = shalt.err (!%p1631_p10)
}
  0x1d   :  { %s1635_s1 = scalar_lea.vmem %s67_s13, 512  ;;  %p1640_p12 = scmp.lt.s32.totalorder %s67_s13, %s67_s13 }
  0x1e   :  { %p1636_p11 = scmp.ne.s32.totalorder %s67_s13, %s1635_s1  ;;  %p1641_p13 = scmp.lt.s32.totalorder %s1635_s1, %s1635_s1 }
  0x20   :  { %p1642_p0 = por %p1641_p13, %p1640_p12 }
  0x22   :  { %p1643_p1 = pnand %p1642_p0, %p1636_p11 }
  0x24   :  { %1646 = shalt.err (!%p1643_p1)
}
  0x25   :  { %s1772_s18 = smov 64   ;;  %s1773_s24 = smov 4  }
  0x26   :  { %72 = dma.hbm_to_vmem [thread:$0]  %s2186_s5, 512, %s67_s13, [#allocation9], %s1772_s18, %s1772_s18, %s1773_s24  }
  0x27   :  { %s1647_s12 = scalar_lea.hbm %s2181_s0, 256 }
  0x28   :  { %p1648_p2 = scmp.ne.s32.totalorder %s2181_s0, %s1647_s12  ;;  %p1651_p3 = scmp.lt.u32.totalorder %s1647_s12, %s2181_s0 }
  0x2a   :  { %p1653_p4 = pnand %p1651_p3, %p1648_p2 }
  0x2c   :  { %1656 = shalt.err (!%p1653_p4)
}
  0x2d   :  { %s1657_s20 = scalar_lea.vmem %s27_s15, 256  ;;  %p1662_p6 = scmp.lt.s32.totalorder %s27_s15, %s27_s15 }
  0x2e   :  { %p1658_p5 = scmp.ne.s32.totalorder %s27_s15, %s1657_s20  ;;  %p1663_p7 = scmp.lt.s32.totalorder %s1657_s20, %s1657_s20 }
  0x30   :  { %p1664_p8 = por %p1663_p7, %p1662_p6 }
  0x32   :  { %p1665_p9 = pnand %p1664_p8, %p1658_p5 }
  0x34   :  { %1668 = shalt.err (!%p1665_p9)
}
  0x35   :  { %32 = dma.hbm_to_vmem [thread:$0]  %s2181_s0, 256, %s27_s15, [#allocation3], %s1768_s27, %s1768_s27, %s1769_s28  }
  0x36   :  { %s1774_s21 = smov [#allocation7]   ;;  %s1775_s23 = smov [#allocation10]  }
  0x37   :  { %s54_s22 = sshll.u32 %s1774_s21, 4  ;;  %s82_s1 = sshll.u32 %s1775_s23, 4  ;;  %s55_s22 = int_to_ptr.vmem [resolvable:$true] %s54_s22  ;;  %s83_s1 = int_to_ptr.vmem [resolvable:$true] %s82_s1 }
  0x38   :  { %s1669_s29 = scalar_lea.hbm %s2185_s4, 512 }
  0x39   :  { %p1670_p10 = scmp.ne.s32.totalorder %s2185_s4, %s1669_s29  ;;  %p1673_p11 = scmp.lt.u32.totalorder %s1669_s29, %s2185_s4 }
  0x3b   :  { %p1675_p12 = pnand %p1673_p11, %p1670_p10 }
  0x3d   :  { %1678 = shalt.err (!%p1675_p12)
}
  0x3e   :  { %s1679_s0 = scalar_lea.vmem %s55_s22, 512  ;;  %p1684_p0 = scmp.lt.s32.totalorder %s55_s22, %s55_s22 }
  0x3f   :  { %p1680_p13 = scmp.ne.s32.totalorder %s55_s22, %s1679_s0  ;;  %p1685_p1 = scmp.lt.s32.totalorder %s1679_s0, %s1679_s0 }
  0x41   :  { %p1686_p2 = por %p1685_p1, %p1684_p0 }
  0x43   :  { %p1687_p3 = pnand %p1686_p2, %p1680_p13 }
  0x45   :  { %1690 = shalt.err (!%p1687_p3)
}
  0x46   :  { %60 = dma.hbm_to_vmem [thread:$0]  %s2185_s4, 512, %s55_s22, [#allocation6], %s1772_s18, %s1772_s18, %s1773_s24  }
  0x47   :  { %s1691_s5 = scalar_lea.hbm %s2189_s8, 1024 }
  0x48   :  { %p1692_p4 = scmp.ne.s32.totalorder %s2189_s8, %s1691_s5  ;;  %p1695_p5 = scmp.lt.u32.totalorder %s1691_s5, %s2189_s8 }
  0x4a   :  { %p1697_p6 = pnand %p1695_p5, %p1692_p4 }
  0x4c   :  { %1700 = shalt.err (!%p1697_p6)
}
  0x4d   :  { %s1701_s26 = scalar_lea.vmem %s83_s1, 1024  ;;  %p1706_p8 = scmp.lt.s32.totalorder %s83_s1, %s83_s1 }
  0x4e   :  { %p1702_p7 = scmp.ne.s32.totalorder %s83_s1, %s1701_s26  ;;  %p1707_p9 = scmp.lt.s32.totalorder %s1701_s26, %s1701_s26 }
  0x50   :  { %p1708_p10 = por %p1707_p9, %p1706_p8 }
  0x52   :  { %p1709_p11 = pnand %p1708_p10, %p1702_p7 }
  0x54   :  { %1712 = shalt.err (!%p1709_p11)
}
  0x55   :  { %s1776_s4 = smov 256   ;;  %s1777_s22 = smov 16  }
  0x56   :  { %88 = dma.hbm_to_vmem [thread:$0]  %s2189_s8, 1024, %s83_s1, [#allocation9], %s1776_s4, %s1776_s4, %s1777_s22  }
  0x57   :  { %s1778_s12 = smov [#allocation11]   ;;  %s1713_s15 = scalar_lea.hbm %s2190_s9, 256 }
  0x58   :  { %s94_s14 = sshll.u32 %s1778_s12, 4  ;;  %p1714_p12 = scmp.ne.s32.totalorder %s2190_s9, %s1713_s15  ;;  %s95_s14 = int_to_ptr.vmem [resolvable:$true] %s94_s14 }
  0x59   :  { %p1717_p13 = scmp.lt.u32.totalorder %s1713_s15, %s2190_s9 }
  0x5b   :  { %p1719_p0 = pnand %p1717_p13, %p1714_p12 }
  0x5d   :  { %1722 = shalt.err (!%p1719_p0)
}
  0x5e   :  { %s1723_s13 = scalar_lea.vmem %s95_s14, 256  ;;  %p1728_p2 = scmp.lt.s32.totalorder %s95_s14, %s95_s14 }
  0x5f   :  { %p1724_p1 = scmp.ne.s32.totalorder %s95_s14, %s1723_s13  ;;  %p1729_p3 = scmp.lt.s32.totalorder %s1723_s13, %s1723_s13 }
  0x61   :  { %p1730_p4 = por %p1729_p3, %p1728_p2 }
  0x63   :  { %p1731_p5 = pnand %p1730_p4, %p1724_p1 }
  0x65   :  { %1734 = shalt.err (!%p1731_p5)
}
  0x66   :  { %100 = dma.hbm_to_vmem [thread:$0]  %s2190_s9, 256, %s95_s14, [#allocation12], %s1772_s18, %s1772_s18, %s1773_s24  }
  0x67   :  { %1757 = dma.done.wait [#allocation3], 256  }
  0x68   :  { %1758 = vsyncadd [#allocation3], 4294967040 }
  0x69   :  { %1759 = dma.done.wait [#allocation6], 768  }
  0x6a   :  { %1760 = vsyncadd [#allocation6], 4294966528 }
  0x6b   :  { %1761 = dma.done.wait [#allocation9], 1536  }
  0x6c   :  { %1762 = vsyncadd [#allocation9], 4294965760 }
  0x6d   :  { %1763 = dma.done.wait [#allocation12], 256  }
  0x6e   :  { %1764 = vsyncadd [#allocation12], 4294967040  ;;  %v1779_v0 = vmov 0.0   ;;  %vm1780_vm0 = vmmov 0   ;;  %v1527_v1 = vld [vmem:[%s2183_s2] sm:$0xff]   ;;  %v1528_v2 = vld [vmem:[%s2183_s2 + $0x8] sm:$0xff]  }
  0x6f   :  { %1417 = vmatprep.subr.bf16.mxu0 %v1779_v0  ;;  %1423 = vmatprep.mubr.msk.bf16.mxu0 %vm1780_vm0, %v1779_v0  ;;  %v1529_v3 = vld [vmem:[%s2183_s2 + $0x10] sm:$0xff]   ;;  %v122_v4 = vld [vmem:[#allocation2] sm:$0xff]  ;;  %v123_v5 = vld [vmem:[#allocation2 + $0x8] sm:$0xff]  ;;  %vm153_vm1 = vcmask 392192   ;;  %vm287_vm2 = vcmask 261120   ;;  %vm223_vm3 = vcmask 1043456  }
  0x70   :  { %1427 = vmatprep.subr.bf16.mxu1 %v1779_v0  ;;  %1433 = vmatprep.mubr.msk.bf16.mxu1 %vm1780_vm0, %v1779_v0  ;;  %v1530_v6 = vld [vmem:[#allocation7] sm:$0xff]   ;;  %v124_v7 = vpack.c.bf16 %v123_v5, %v122_v4  ;;  %v1531_v8 = vld [vmem:[#allocation7 + $0x8] sm:$0xff]   ;;  %v1534_v40 = vld [vmem:[%s2184_s3 + $0x10] ss:$0 sps:$4 sm:$0xff]   ;;  %vm219_vm4 = vcmask 326656   ;;  %vm465_vm5 = vcmask 523264  }
  0x71   :  { %1418 = vmatpush3.bf16.msra.mxu0 %v1527_v1  ;;  %v134_v9 = vld [vmem:[%s2191_s10] ss:$0 sm:$0xff]  ;;  %v1533_v39 = vld [vmem:[%s2184_s3 + $0x8] sm:$0xff]   ;;  %v225_v41 = vsel %vm223_vm3, %v1534_v40, 0  ;;  %v125_v42 = vld [vmem:[#allocation5] sm:$0xff]  ;;  %s1782_s30 = smov [#allocation13]  }
  0x72   :  { %1419 = vmatprep.subr.bf16.mxu0 %v1779_v0  ;;  %v274_v17 = vld [vmem:[%s2191_s10 + $0x20] ss:$0 sm:$0xff]  ;;  %v126_v43 = vld [vmem:[#allocation5 + $0x8] sm:$0xff]  ;;  %v1536_v46 = vld [vmem:[#allocation8 + $0x8] sm:$0xff]   ;;  %s1304_s12 = sshll.u32 %s1782_s30, 4  ;;  %s1305_s12 = int_to_ptr.vmem [resolvable:$true] %s1304_s12 }
  0x73   :  { %v1532_v38 = vld [vmem:[%s2184_s3] sm:$0xff]   ;;  %v127_v44 = vpack.c.bf16 %v126_v43, %v125_v42  ;;  %v1538_v48 = vld [vmem:[%s2187_s6 + $0x8] sm:$0xff]   ;;  %s1735_s14 = scalar_lea.vmem %s1305_s12, 256  ;;  %p1740_p7 = scmp.lt.s32.totalorder %s1305_s12, %s1305_s12 }
  0x74   :  { %1428 = vmatpush3.bf16.msra.mxu1 %v1532_v38  ;;  %v1535_v45 = vld [vmem:[#allocation8] sm:$0xff]   ;;  %p1736_p6 = scmp.ne.s32.totalorder %s1305_s12, %s1735_s14  ;;  %p1741_p8 = scmp.lt.s32.totalorder %s1735_s14, %s1735_s14 }
  0x75   :  { %1420 = vmatpush3.bf16.msra.mxu0 %v1528_v2  ;;  %1429 = vmatprep.subr.bf16.mxu1 %v1779_v0  ;;  %v1537_v47 = vld [vmem:[%s2187_s6] sm:$0xff]  }
  0x76   :  { %1421 = vmatprep.subr.bf16.mxu0 %v1779_v0  ;;  %v334_v57 = vld [vmem:[%s2191_s10 + $0x23] ss:$0 sm:$0xff]  ;;  %v335_v61 = vld [vmem:[%s2191_s10 + $0x24] ss:$0 sm:$0xff]  ;;  %p1742_p9 = por %p1741_p8, %p1740_p7 }
  0x78   :  { %1430 = vmatpush3.bf16.msra.mxu1 %v1533_v39  ;;  %p1743_p10 = pnand %p1742_p9, %p1736_p6 }
  0x79   :  { %1422 = vmatpush3.bf16.msra.mxu0 %v1529_v3  ;;  %1431 = vmatprep.subr.bf16.mxu1 %v1779_v0  ;;  %v203_v3 = vld [vmem:[%s2191_s10 + $0x1] ss:$0 sm:$0xff] }
  0x7a   :  { %1437 = vmatprep.subr.bf16.mxu0 %v1779_v0 }
  0x7c   :  { %1424 = vmatmul.mubr.msk.bf16.vlgmr.msra.gmra.mrb[0].mxu0 %vm153_vm1, %v124_v7  ;;  %1432 = vmatpush3.bf16.msra.mxu1 %v225_v41 }
  0x7d   :  { %1438 = vmatpush3.bf16.msra.mxu0 %v1530_v6  ;;  %1441 = vmatprep.mubr.msk.bf16.mxu0 %vm1780_vm0, %v1779_v0 }
  0x7e   :  { %1439 = vmatprep.subr.bf16.mxu0 %v1779_v0  ;;  %1445 = vmatprep.subr.bf16.mxu1 %v1779_v0 }
  0x7f   :  { %1434 = vmatmul.mubr.msk.bf16.vlgmr.msra.gmra.mrb[0].mxu1 %vm219_vm4, %v127_v44 }
  0x80   :  { %1449 = vmatprep.mubr.msk.bf16.mxu1 %vm1780_vm0, %v1779_v0  ;;  %1446 = vmatpush3.bf16.msra.mxu1 %v1535_v45 }
  0x81   :  { %1440 = vmatpush3.bf16.msra.mxu0 %v1531_v8  ;;  %1447 = vmatprep.subr.bf16.mxu1 %v1779_v0 }
  0x82   :  { %1453 = vmatprep.subr.bf16.mxu0 %v1779_v0 }
  0x84   :  { %1448 = vmatpush3.bf16.msra.mxu1 %v1536_v46 }
  0x85   :  { %1465 = vmatprep.subr.bf16.mxu1 %v1779_v0 }
 0x14f   :  { %v191_v10 = vpop.f32.mrb[0].mxu0 }
 0x150   :  { %v1425_v11 = vpop.f32.mrb[1].mxu0  ;;  %v1955_v13 = vadd.f32 %v191_v10, %v134_v9 }
 0x151   :  { %v194_v12 = vpop.f32.mrb[2].mxu0  ;;  %v1539_v11 = vld [vmem:[%s2187_s6 + $0x10] sm:$0xff]  }
 0x152   :  { %v1957_v14 = vadd.f32 %v194_v12, %v134_v9  ;;  %v1426_v15 = vpop.f32.mrb[3].mxu0  ;;  %v261_v4 = vpop.f32.mrb[0].mxu1  ;;  %v1540_v12 = vld [vmem:[%s2187_s6 + $0x18] sm:$0xff]  }
 0x153   :  { %v262_v5 = vadd.f32 %v261_v4, %v203_v3  ;;  %v1435_v6 = vpop.f32.mrb[1].mxu1  ;;  %v372_v15 = vld [vmem:[%s2191_s10 + $0x21] ss:$0 sm:$0xff] }
 0x154   :  { %v1961_v16 = vpack.c.bf16 %v1957_v14, %v1955_v13  ;;  %v264_v7 = vpop.f32.mrb[2].mxu1 }
 0x155   :  { %v265_v8 = vadd.f32 %v264_v7, %v203_v3  ;;  %v1436_v9 = vpop.f32.mrb[3].mxu1  ;;  %v550_v3 = vld [vmem:[%s2191_s10 + $0x27] ss:$0 sm:$0xff] }
 0x156   :  { %1442 = vmatmul.mubr.msk.bf16.vlgmr.msra.gmra.mrb[4].mxu0 %vm287_vm2, %v1961_v16 }
 0x157   :  { %1461 = vmatprep.mubr.msk.bf16.mxu0 %vm1780_vm0, %v1779_v0  ;;  %1454 = vmatpush3.bf16.msra.mxu0 %v1537_v47  ;;  %v2012_v10 = vpack.c.bf16 %v265_v8, %v262_v5  ;;  %v1541_v47 = vld [vmem:[#allocation7 + $0x10] sm:$0xff]  }
 0x158   :  { %1455 = vmatprep.subr.bf16.mxu0 %v1779_v0 }
 0x15b   :  { %1456 = vmatpush3.bf16.msra.mxu0 %v1538_v48  ;;  %v1542_v48 = vld [vmem:[#allocation7 + $0x18] sm:$0xff]  }
 0x15c   :  { %1457 = vmatprep.subr.bf16.mxu0 %v1779_v0 }
 0x15f   :  { %1458 = vmatpush3.bf16.msra.mxu0 %v1539_v11 }
 0x160   :  { %1459 = vmatprep.subr.bf16.mxu0 %v1779_v0 }
 0x163   :  { %1460 = vmatpush3.bf16.msra.mxu0 %v1540_v12 }
 0x164   :  { %1481 = vmatprep.subr.bf16.mxu0 %v1779_v0 }
 0x229   :  { %v325_v18 = vpop.f32.mrb[4].mxu0 }
 0x22a   :  { %v326_v19 = vadd.f32 %v325_v18, %v274_v17  ;;  %v1443_v20 = vpop.f32.mrb[5].mxu0 }
 0x22b   :  { %v328_v21 = vpop.f32.mrb[6].mxu0 }
 0x22c   :  { %v329_v22 = vadd.f32 %v328_v21, %v274_v17  ;;  %v1444_v23 = vpop.f32.mrb[7].mxu0  ;;  %v332_v24 = vadd.f32 %v326_v19, %v1955_v13 }
 0x22e   :  { %v336_v25 = vsel %vm287_vm2, %v332_v24, 0.0  ;;  %v333_v26 = vadd.f32 %v329_v22, %v1957_v14 }
 0x22f   :  { %337 = vadd.xlane.f32.xlu0 %v336_v25 }
 0x230   :  { %v339_v27 = vsel %vm287_vm2, %v333_v26, 0.0 }
 0x233   :  { %340 = vadd.xlane.f32.xlu0 %v339_v27 }
 0x2bc   :  { %v338_v28 = vpop.xlane.xlu0 %337 }
 0x2bd   :  { %v343_v29 = vmul.f32 0.03125, %v338_v28 }
 0x2bf   :  { %v345_v30 = vsub.f32 %v332_v24, %v343_v29 }
 0x2c0   :  { %v341_v31 = vpop.xlane.xlu0 %340 }
 0x2c1   :  { %v344_v32 = vmul.f32 0.03125, %v341_v31  ;;  %v347_v33 = vmul.f32 %v345_v30, %v345_v30 }
 0x2c3   :  { %v346_v34 = vsub.f32 %v333_v26, %v344_v32  ;;  %v349_v35 = vsel %vm287_vm2, %v347_v33, 0.0  ;;  %v440_v26 = vld [vmem:[%s2191_s10 + $0x22] ss:$0 sm:$0xff] }
 0x2c4   :  { %350 = vadd.xlane.f32.xlu1 %v349_v35 }
 0x2c5   :  { %v348_v36 = vmul.f32 %v346_v34, %v346_v34 }
 0x2c7   :  { %v352_v37 = vsel %vm287_vm2, %v348_v36, 0.0 }
 0x2c8   :  { %353 = vadd.xlane.f32.xlu1 %v352_v37 }
 0x351   :  { %v351_v49 = vpop.xlane.xlu1 %350 }
 0x352   :  { %v355_v50 = vmul.f32 0.03125, %v351_v49 }
 0x354   :  { %v357_v51 = vadd.f32 1e-05, %v355_v50 }
 0x355   :  { %v354_v52 = vpop.xlane.xlu1 %353 }
 0x356   :  { %1575 = vrsqrt.f32 %v357_v51  ;;  %v356_v53 = vmul.f32 0.03125, %v354_v52 }
 0x358   :  { %v358_v54 = vadd.f32 1e-05, %v356_v53 }
 0x35a   :  { %1577 = vrsqrt.f32 %v358_v54 }
 0x360   :  { %v1576_v55 = vpop.eup %1575 }
 0x361   :  { %v361_v56 = vmul.f32 %v1576_v55, %v345_v30 }
 0x363   :  { %v363_v59 = vmul.f32 %v361_v56, %v334_v57  ;;  %v512_v56 = vld [vmem:[%s2191_s10 + $0x25] ss:$0 sm:$0xff] }
 0x364   :  { %v1578_v58 = vpop.eup %1577 }
 0x365   :  { %v362_v60 = vmul.f32 %v1578_v58, %v346_v34  ;;  %v365_v63 = vadd.f32 %v363_v59, %v335_v61 }
 0x367   :  { %v364_v62 = vmul.f32 %v362_v60, %v334_v57 }
 0x369   :  { %v366_v1 = vadd.f32 %v364_v62, %v335_v61  ;;  %v513_v61 = vld [vmem:[%s2191_s10 + $0x26] ss:$0 sm:$0xff] }
 0x36b   :  { %v367_v2 = vpack.c.bf16 %v366_v1, %v365_v63 }
 0x36d   :  { %1450 = vmatmul.mubr.msk.bf16.vlgmr.msra.gmra.mrb[4].mxu1 %vm287_vm2, %v367_v2 }
 0x36e   :  { %1469 = vmatprep.mubr.msk.bf16.mxu1 %vm1780_vm0, %v1779_v0  ;;  %1466 = vmatpush3.bf16.msra.mxu1 %v1541_v47 }
 0x36f   :  { %1467 = vmatprep.subr.bf16.mxu1 %v1779_v0 }
 0x372   :  { %1468 = vmatpush3.bf16.msra.mxu1 %v1542_v48 }
 0x373   :  { %1473 = vmatprep.subr.bf16.mxu1 %v1779_v0 }
 0x440   :  { %v422_v17 = vpop.f32.mrb[4].mxu1 }
 0x441   :  { %v423_v18 = vadd.f32 %v422_v17, %v372_v15  ;;  %v1451_v19 = vpop.f32.mrb[5].mxu1 }
 0x442   :  { %v425_v20 = vpop.f32.mrb[6].mxu1 }
 0x443   :  { %v426_v21 = vadd.f32 %v425_v20, %v372_v15  ;;  %v1452_v22 = vpop.f32.mrb[7].mxu1  ;;  %v429_v23 = vmax.f32 %v423_v18, 0.0 }
 0x445   :  { %v430_v24 = vmax.f32 %v426_v21, 0.0 }
 0x447   :  { %v431_v25 = vpack.c.bf16 %v430_v24, %v429_v23 }
 0x449   :  { %1462 = vmatmul.mubr.msk.bf16.vlgmr.msra.gmra.mrb[8].mxu0 %vm465_vm5, %v431_v25 }
 0x44a   :  { %1489 = vmatprep.mubr.msk.bf16.mxu0 %vm1780_vm0, %v1779_v0 }
 0x51c   :  { %v503_v27 = vpop.f32.mrb[8].mxu0 }
 0x51d   :  { %v504_v28 = vadd.f32 %v503_v27, %v440_v26  ;;  %v1463_v29 = vpop.f32.mrb[9].mxu0 }
 0x51e   :  { %v506_v30 = vpop.f32.mrb[10].mxu0  ;;  %v1544_v29 = vld [vmem:[#allocation8 + $0x18] sm:$0xff]  }
 0x51f   :  { %v507_v31 = vadd.f32 %v506_v30, %v440_v26  ;;  %v1464_v32 = vpop.f32.mrb[11].mxu0  ;;  %v510_v33 = vadd.f32 %v504_v28, %v365_v63  ;;  %v1543_v28 = vld [vmem:[#allocation8 + $0x10] sm:$0xff]  }
 0x520   :  { %v1547_v30 = vld [vmem:[#allocation10 + $0x4] ss:$16 sps:$4 sm:$0xff]  }
 0x521   :  { %v514_v34 = vsel %vm287_vm2, %v510_v33, 0.0  ;;  %v511_v35 = vadd.f32 %v507_v31, %v366_v1  ;;  %v1781_v31 = vmov 0   ;;  %v1569_v32 = vld [vmem:[%s2187_s6 + $0x20] sm:$0xff]  }
 0x522   :  { %515 = vadd.xlane.f32.xlu0 %v514_v34  ;;  %1526 = vset.pattern.permute.xlu1 %v1781_v31 }
 0x523   :  { %v517_v36 = vsel %vm287_vm2, %v511_v35, 0.0  ;;  %1525 = vset.pattern.permute.xlu0 %v1781_v31  ;;  %1482 = vmatpush3.bf16.msra.mxu0 %v1569_v32 }
 0x524   :  { %518 = vadd.xlane.f32.xlu1 %v517_v36  ;;  %1483 = vmatprep.subr.bf16.mxu0 %v1779_v0 }
 0x5af   :  { %v516_v37 = vpop.xlane.xlu0 %515 }
 0x5b0   :  { %v520_v38 = vmul.f32 0.03125, %v516_v37 }
 0x5b1   :  { %v519_v39 = vpop.xlane.xlu1 %518 }
 0x5b2   :  { %v522_v40 = vsub.f32 %v510_v33, %v520_v38  ;;  %v521_v41 = vmul.f32 0.03125, %v519_v39  ;;  %v1570_v33 = vld [vmem:[%s2187_s6 + $0x28] sm:$0xff]  }
 0x5b3   :  { %1484 = vmatpush3.bf16.msra.mxu0 %v1570_v33 }
 0x5b4   :  { %v523_v42 = vsub.f32 %v511_v35, %v521_v41  ;;  %v524_v43 = vmul.f32 %v522_v40, %v522_v40  ;;  %1485 = vmatprep.subr.bf16.mxu0 %v1779_v0  ;;  %v609_v41 = vld [vmem:[%s2191_s10 + $0x42] ss:$0 sm:$0xff] }
 0x5b6   :  { %v526_v44 = vsel %vm287_vm2, %v524_v43, 0.0  ;;  %v525_v45 = vmul.f32 %v523_v42, %v523_v42 }
 0x5b7   :  { %527 = vadd.xlane.f32.xlu0 %v526_v44 }
 0x5b8   :  { %v529_v46 = vsel %vm287_vm2, %v525_v45, 0.0 }
 0x5b9   :  { %530 = vadd.xlane.f32.xlu1 %v529_v46  ;;  %v610_v46 = vld [vmem:[%s2191_s10 + $0x43] ss:$0 sm:$0xff] }
 0x644   :  { %v528_v49 = vpop.xlane.xlu0 %527 }
 0x645   :  { %v532_v50 = vmul.f32 0.03125, %v528_v49 }
 0x646   :  { %v531_v51 = vpop.xlane.xlu1 %530 }
 0x647   :  { %v534_v52 = vadd.f32 1e-05, %v532_v50  ;;  %v533_v53 = vmul.f32 0.03125, %v531_v51  ;;  %v1545_v50 = vld [vmem:[#allocation10] ss:$16 sps:$4 sm:$0xff]  }
 0x649   :  { %1579 = vrsqrt.f32 %v534_v52  ;;  %v535_v54 = vadd.f32 1e-05, %v533_v53  ;;  %v1550_v52 = vld [vmem:[#allocation10 + $0x24] ss:$16 sps:$4 sm:$0xff]   ;;  %v1548_v53 = vld [vmem:[#allocation10 + $0x20] ss:$16 sps:$4 sm:$0xff]  }
 0x64b   :  { %1581 = vrsqrt.f32 %v535_v54  ;;  %v1553_v54 = vld [vmem:[#allocation10 + $0xc] ss:$16 sps:$4 sm:$0xff]  }
 0x653   :  { %v1580_v55 = vpop.eup %1579 }
 0x654   :  { %v538_v57 = vmul.f32 %v1580_v55, %v522_v40  ;;  %v1551_v55 = vld [vmem:[#allocation10 + $0x8] ss:$16 sps:$4 sm:$0xff]  }
 0x655   :  { %v1582_v58 = vpop.eup %1581 }
 0x656   :  { %v540_v59 = vmul.f32 %v538_v57, %v512_v56  ;;  %v539_v60 = vmul.f32 %v1582_v58, %v523_v42  ;;  %v1554_v57 = vld [vmem:[#allocation10 + $0x28] ss:$16 sps:$4 sm:$0xff]   ;;  %v1559_v58 = vld [vmem:[%s2188_s7 + $0x4] ss:$16 sps:$4 sm:$0xff]  }
 0x658   :  { %v541_v62 = vmul.f32 %v539_v60, %v512_v56  ;;  %v542_v63 = vadd.f32 %v540_v59, %v513_v61  ;;  %v1556_v56 = vld [vmem:[#allocation10 + $0x2c] ss:$16 sps:$4 sm:$0xff]   ;;  %v1557_v59 = vld [vmem:[%s2188_s7] ss:$16 sps:$4 sm:$0xff]   ;;  %v1562_v60 = vld [vmem:[%s2188_s7 + $0x24] ss:$16 sps:$4 sm:$0xff]  }
 0x65a   :  { %v543_v1 = vadd.f32 %v541_v62, %v513_v61  ;;  %v1560_v61 = vld [vmem:[%s2188_s7 + $0x20] ss:$16 sps:$4 sm:$0xff]   ;;  %v1565_v62 = vld [vmem:[%s2188_s7 + $0xc] ss:$16 sps:$4 sm:$0xff]  }
 0x65c   :  { %v544_v2 = vpack.c.bf16 %v543_v1, %v542_v63 }
 0x65e   :  { %1470 = vmatmul.mubr.msk.bf16.vlgmr.msra.gmra.mrb[8].mxu1 %vm287_vm2, %v544_v2  ;;  %v1571_v2 = vld [vmem:[%s2187_s6 + $0x30] sm:$0xff]  }
 0x65f   :  { %1477 = vmatprep.mubr.msk.bf16.mxu1 %vm1780_vm0, %v1779_v0  ;;  %1474 = vmatpush3.bf16.msra.mxu1 %v1543_v28 }
 0x660   :  { %1475 = vmatprep.subr.bf16.mxu1 %v1779_v0  ;;  %1486 = vmatpush3.bf16.msra.mxu0 %v1571_v2 }
 0x661   :  { %1487 = vmatprep.subr.bf16.mxu0 %v1779_v0 }
 0x663   :  { %1476 = vmatpush3.bf16.msra.mxu1 %v1544_v29 }
 0x664   :  { %878 = vmatprep.subr.bf16.mxu1 %v1547_v30 }
 0x731   :  { %v600_v4 = vpop.f32.mrb[8].mxu1 }
 0x732   :  { %v601_v5 = vadd.f32 %v600_v4, %v550_v3  ;;  %v1471_v6 = vpop.f32.mrb[9].mxu1  ;;  %v647_v4 = vld [vmem:[%s2191_s10 + $0x40] ss:$0 sm:$0xff] }
 0x733   :  { %v603_v7 = vpop.f32.mrb[10].mxu1 }
 0x734   :  { %v604_v8 = vadd.f32 %v603_v7, %v550_v3  ;;  %v1472_v9 = vpop.f32.mrb[11].mxu1  ;;  %v607_v11 = vadd.f32 %v601_v5, %v542_v63  ;;  %v1563_v63 = vld [vmem:[%s2188_s7 + $0x8] ss:$16 sps:$4 sm:$0xff]  }
 0x735   :  { %v1572_v3 = vld [vmem:[%s2187_s6 + $0x38] sm:$0xff]  }
 0x736   :  { %v611_v12 = vsel %vm287_vm2, %v607_v11, 0.0  ;;  %v608_v15 = vadd.f32 %v604_v8, %v543_v1  ;;  %v1566_v1 = vld [vmem:[%s2188_s7 + $0x28] ss:$16 sps:$4 sm:$0xff]   ;;  %1488 = vmatpush3.bf16.msra.mxu0 %v1572_v3 }
 0x737   :  { %612 = vadd.xlane.f32.xlu0 %v611_v12  ;;  %1493 = vmatprep.subr.bf16.mxu0 %v1779_v0 }
 0x738   :  { %v614_v17 = vsel %vm287_vm2, %v608_v15, 0.0 }
 0x739   :  { %615 = vadd.xlane.f32.xlu1 %v614_v17  ;;  %v1093_v17 = vlaneseq }
 0x7c4   :  { %v613_v18 = vpop.xlane.xlu0 %612 }
 0x7c5   :  { %v617_v19 = vmul.f32 0.03125, %v613_v18  ;;  %v1094_v18 = vshrl.u32 %v1093_v17, 7 }
 0x7c6   :  { %v616_v20 = vpop.xlane.xlu1 %615 }
 0x7c7   :  { %v619_v21 = vsub.f32 %v607_v11, %v617_v19  ;;  %v618_v22 = vmul.f32 0.03125, %v616_v20  ;;  %v1095_v19 = vsub.s32 0, %v1094_v18  ;;  %v1377_v20 = vld [vmem:[%s2191_s10 + $0x2] ss:$8 sm:$0xf]  ;;  %v1103_v29 = vsub.s32 2, %v1094_v18 }
 0x7c8   :  { %v1107_v33 = vsub.s32 3, %v1094_v18 }
 0x7c9   :  { %v620_v23 = vsub.f32 %v608_v15, %v618_v22  ;;  %v621_v24 = vmul.f32 %v619_v21, %v619_v21  ;;  %v1096_v22 = vrot.slane %v1377_v20, %v1095_v19 }
 0x7cb   :  { %v623_v25 = vsel %vm287_vm2, %v621_v24, 0.0  ;;  %v622_v26 = vmul.f32 %v620_v23, %v620_v23 }
 0x7cc   :  { %624 = vadd.xlane.f32.xlu0 %v623_v25 }
 0x7cd   :  { %v626_v27 = vsel %vm287_vm2, %v622_v26, 0.0 }
 0x7ce   :  { %627 = vadd.xlane.f32.xlu1 %v626_v27 }
 0x859   :  { %v625_v34 = vpop.xlane.xlu0 %624 }
 0x85a   :  { %v629_v35 = vmul.f32 0.03125, %v625_v34 }
 0x85b   :  { %v628_v36 = vpop.xlane.xlu1 %627 }
 0x85c   :  { %v631_v37 = vadd.f32 1e-05, %v629_v35  ;;  %v630_v38 = vmul.f32 0.03125, %v628_v36 }
 0x85e   :  { %1583 = vrsqrt.f32 %v631_v37  ;;  %v632_v39 = vadd.f32 1e-05, %v630_v38 }
 0x860   :  { %1585 = vrsqrt.f32 %v632_v39 }
 0x868   :  { %v1584_v40 = vpop.eup %1583 }
 0x869   :  { %v635_v42 = vmul.f32 %v1584_v40, %v619_v21  ;;  %v1099_v21 = vsub.s32 1, %v1094_v18 }
 0x86a   :  { %v1586_v43 = vpop.eup %1585 }
 0x86b   :  { %v637_v44 = vmul.f32 %v635_v42, %v609_v41  ;;  %v636_v45 = vmul.f32 %v1586_v43, %v620_v23  ;;  %v1378_v23 = vld [vmem:[%s2191_s10 + $0x3] ss:$8 sm:$0xf]  ;;  %v1100_v24 = vrot.slane %v1377_v20, %v1099_v21 }
 0x86c   :  { %v1135_v27 = vrot.slane %v1378_v23, %v1095_v19 }
 0x86d   :  { %v638_v47 = vmul.f32 %v636_v45, %v609_v41  ;;  %v2068_v48 = vadd.f32 %v637_v44, %v610_v46  ;;  %v1104_v41 = vrot.slane %v1377_v20, %v1103_v29  ;;  %v1108_v44 = vrot.slane %v1377_v20, %v1107_v33 }
 0x86f   :  { %v2070_v49 = vadd.f32 %v638_v47, %v610_v46 }
 0x871   :  { %v641_v51 = vpack.c.bf16 %v2070_v49, %v2068_v48 }
 0x873   :  { %1478 = vmatmul.mubr.msk.bf16.vlgmr.msra.gmra.mrb[12].mxu1 %vm287_vm2, %v641_v51 }
 0x874   :  { %879 = vmatpush1.bf16.msra.mxu1 %v1545_v50  ;;  %910 = vmatprep.mubr.bf16.mxu1 %v1781_v31 }
 0x875   :  { %880 = vmatprep.subr.bf16.mxu1 %v1550_v52  ;;  %v1143_v52 = vrot.slane %v1378_v23, %v1103_v29 }
 0x878   :  { %881 = vmatpush1.bf16.msra.mxu1 %v1548_v53 }
 0x879   :  { %921 = vmatprep.subr.bf16.mxu1 %v1553_v54 }
 0x87b   :  { %1365 = vmatmul.mubr.msk.bf16.vlgmr.msra.gmra.mrb[16].mxu1 %vm287_vm2, %v2012_v10 }
 0x87c   :  { %922 = vmatpush1.bf16.msra.mxu1 %v1551_v55  ;;  %953 = vmatprep.mubr.bf16.mxu1 %v1781_v31 }
 0x87d   :  { %923 = vmatprep.subr.bf16.mxu1 %v1556_v56  ;;  %v1147_v56 = vrot.slane %v1378_v23, %v1107_v33 }
 0x880   :  { %924 = vmatpush1.bf16.msra.mxu1 %v1554_v57 }
 0x881   :  { %1004 = vmatprep.subr.bf16.mxu1 %v1559_v58 }
 0x883   :  { %1366 = vmatmul.mubr.msk.bf16.vlgmr.msra.gmra.mrb[20].mxu1 %vm287_vm2, %v2012_v10  ;;  %v1568_v10 = vld [vmem:[%s2188_s7 + $0x2c] ss:$16 sps:$4 sm:$0xff]  }
 0x884   :  { %1005 = vmatpush1.bf16.msra.mxu1 %v1557_v59  ;;  %1036 = vmatprep.mubr.bf16.mxu1 %v1781_v31 }
 0x885   :  { %1006 = vmatprep.subr.bf16.mxu1 %v1562_v60 }
 0x888   :  { %1007 = vmatpush1.bf16.msra.mxu1 %v1560_v61 }
 0x889   :  { %1047 = vmatprep.subr.bf16.mxu1 %v1565_v62 }
 0x88b   :  { %1375 = vmatmul.mubr.msk.bf16.vlgmr.msra.gmra.mrb[16].mxu1 %vm287_vm2, %v1961_v16 }
 0x88c   :  { %1048 = vmatpush1.bf16.msra.mxu1 %v1563_v63  ;;  %1079 = vmatprep.mubr.bf16.mxu1 %v1781_v31  ;;  %v1139_v31 = vrot.slane %v1378_v23, %v1099_v21 }
 0x88d   :  { %1049 = vmatprep.subr.bf16.mxu1 %v1568_v10 }
 0x890   :  { %1050 = vmatpush1.bf16.msra.mxu1 %v1566_v1 }
 0x893   :  { %1376 = vmatmul.mubr.msk.bf16.vlgmr.msra.gmra.mrb[20].mxu1 %vm287_vm2, %v1961_v16 }
 0x946   :  { %v697_v5 = vpop.f32.mrb[12].mxu1 }
 0x947   :  { %v698_v16 = vadd.f32 %v697_v5, %v647_v4  ;;  %v1479_v6 = vpop.f32.mrb[13].mxu1 }
 0x948   :  { %v700_v7 = vpop.f32.mrb[14].mxu1 }
 0x949   :  { %v701_v8 = vadd.f32 %v700_v7, %v647_v4  ;;  %v1480_v9 = vpop.f32.mrb[15].mxu1  ;;  %v704_v11 = vmax.f32 %v698_v16, 0.0 }
 0x94b   :  { %v705_v12 = vmax.f32 %v701_v8, 0.0  ;;  %v716_v8 = vld [vmem:[%s2191_s10 + $0x41] ss:$0 sm:$0xff] }
 0x94d   :  { %v706_v15 = vpack.c.bf16 %v705_v12, %v704_v11 }
 0x94f   :  { %1490 = vmatmul.mubr.msk.bf16.vlgmr.msra.gmra.mrb[12].mxu0 %vm465_vm5, %v706_v15 }
 0x950   :  { %1497 = vmatprep.mubr.msk.bf16.mxu0 %vm1780_vm0, %v1779_v0 }
 0x95e   :  { %v1038_v25 = vpop.f32.mrb[16].mxu1 }
 0x95f   :  { %v1113_v26 = vadd.f32 %v1096_v22, %v1038_v25  ;;  %v1040_v28 = vpop.f32.mrb[17].mxu1 }
 0x960   :  { %v1114_v30 = vadd.f32 %v1100_v24, %v1040_v28  ;;  %v1042_v32 = vpop.f32.mrb[18].mxu1 }
 0x961   :  { %v1121_v34 = vmax.f32 %v1113_v26, 0.0  ;;  %v1117_v35 = vadd.f32 %v1096_v22, %v1042_v32  ;;  %v1044_v36 = vpop.f32.mrb[19].mxu1  ;;  %v1170_v26 = vld [vmem:[%s2191_s10 + $0x7] ss:$0 sm:$0xff] }
 0x962   :  { %v1122_v37 = vmax.f32 %v1114_v30, 0.0  ;;  %v1118_v38 = vadd.f32 %v1100_v24, %v1044_v36 }
 0x963   :  { %v1152_v39 = vmul.f32 %v1135_v27, %v1121_v34  ;;  %v1125_v40 = vmax.f32 %v1117_v35, 0.0 }
 0x964   :  { %v1153_v42 = vmul.f32 %v1139_v31, %v1122_v37  ;;  %v1126_v43 = vmax.f32 %v1118_v38, 0.0 }
 0x965   :  { %v1156_v45 = vmul.f32 %v1135_v27, %v1125_v40 }
 0x966   :  { %v1160_v46 = vadd.f32 %v1153_v42, %v1152_v39  ;;  %v1157_v47 = vmul.f32 %v1139_v31, %v1126_v43  ;;  %v1081_v50 = vpop.f32.mrb[20].mxu1 }
 0x967   :  { %v1115_v51 = vadd.f32 %v1104_v41, %v1081_v50  ;;  %v1083_v53 = vpop.f32.mrb[21].mxu1 }
 0x968   :  { %v1165_v54 = vadd.f32 %v1157_v47, %v1156_v45  ;;  %v1116_v55 = vadd.f32 %v1108_v44, %v1083_v53  ;;  %v1085_v57 = vpop.f32.mrb[22].mxu1  ;;  %v1574_v45 = vld [vmem:[#allocation11 + $0x8] sm:$0xff]  }
 0x969   :  { %v1123_v58 = vmax.f32 %v1115_v51, 0.0  ;;  %v1119_v59 = vadd.f32 %v1104_v41, %v1085_v57  ;;  %v1087_v60 = vpop.f32.mrb[23].mxu1 }
 0x96a   :  { %v1124_v61 = vmax.f32 %v1116_v55, 0.0  ;;  %v1120_v62 = vadd.f32 %v1108_v44, %v1087_v60  ;;  %v1573_v44 = vld [vmem:[#allocation11] sm:$0xff]  }
 0x96b   :  { %v1154_v63 = vmul.f32 %v1143_v52, %v1123_v58  ;;  %v1127_v10 = vmax.f32 %v1119_v59, 0.0  ;;  %1494 = vmatpush3.bf16.msra.mxu0 %v1573_v44  ;;  %v787_v55 = vld [vmem:[%s2191_s10 + $0x44] ss:$0 sm:$0xff] }
 0x96c   :  { %v1155_v1 = vmul.f32 %v1147_v56, %v1124_v61  ;;  %v1128_v2 = vmax.f32 %v1120_v62, 0.0  ;;  %1495 = vmatprep.subr.bf16.mxu0 %v1779_v0  ;;  %v788_v0 = vld [vmem:[%s2191_s10 + $0x45] ss:$0 sm:$0xff] }
 0x96d   :  { %v1158_v3 = vmul.f32 %v1143_v52, %v1127_v10  ;;  %v1161_v4 = vadd.f32 %v1160_v46, %v1154_v63 }
 0x96e   :  { %v1159_v5 = vmul.f32 %v1147_v56, %v1128_v2 }
 0x96f   :  { %v1162_v16 = vadd.f32 %v1161_v4, %v1155_v1  ;;  %v1166_v6 = vadd.f32 %v1165_v54, %v1158_v3  ;;  %1496 = vmatpush3.bf16.msra.mxu0 %v1574_v45 }
 0x971   :  { %v1167_v7 = vadd.f32 %v1166_v6, %v1159_v5 }
 0xa22   :  { %v778_v9 = vpop.f32.mrb[12].mxu0 }
 0xa23   :  { %v779_v11 = vadd.f32 %v778_v9, %v716_v8  ;;  %v1491_v12 = vpop.f32.mrb[13].mxu0 }
 0xa24   :  { %v781_v15 = vpop.f32.mrb[14].mxu0 }
 0xa25   :  { %v782_v17 = vadd.f32 %v781_v15, %v716_v8  ;;  %v1492_v18 = vpop.f32.mrb[15].mxu0  ;;  %v785_v19 = vadd.f32 %v779_v11, %v2068_v48 }
 0xa27   :  { %v789_v20 = vsel %vm287_vm2, %v785_v19, 0.0  ;;  %v786_v21 = vadd.f32 %v782_v17, %v2070_v49 }
 0xa28   :  { %790 = vadd.xlane.f32.xlu0 %v789_v20 }
 0xa29   :  { %v792_v22 = vsel %vm287_vm2, %v786_v21, 0.0 }
 0xa2a   :  { %793 = vadd.xlane.f32.xlu1 %v792_v22 }
 0xa2c   :  { %1163 = vadd.xlane.f32.xlu0 %v1162_v16 }
 0xa2e   :  { %1168 = vadd.xlane.f32.xlu1 %v1167_v7  ;;  %v1206_v7 = vld [vmem:[%s2191_s10 + $0x4] ss:$0 sm:$0xff] }
 0xab5   :  { %v791_v23 = vpop.xlane.xlu0 %790 }
 0xab6   :  { %v795_v24 = vmul.f32 0.03125, %v791_v23 }
 0xab7   :  { %v794_v25 = vpop.xlane.xlu1 %793 }
 0xab8   :  { %v797_v27 = vsub.f32 %v785_v19, %v795_v24  ;;  %v796_v28 = vmul.f32 0.03125, %v794_v25 }
 0xab9   :  { %v1164_v48 = vpop.xlane.xlu0 %1163 }
 0xaba   :  { %v798_v29 = vsub.f32 %v786_v21, %v796_v28  ;;  %v1171_v30 = vadd.f32 %v1170_v26, %v1164_v48  ;;  %v799_v31 = vmul.f32 %v797_v27, %v797_v27 }
 0xabb   :  { %v1169_v49 = vpop.xlane.xlu1 %1168 }
 0xabc   :  { %v1379_v32 = vmul.f32 -1.442695, %v1171_v30  ;;  %v1172_v33 = vadd.f32 %v1170_v26, %v1169_v49  ;;  %v801_v34 = vsel %vm287_vm2, %v799_v31, 0.0  ;;  %v800_v35 = vmul.f32 %v798_v29, %v798_v29 }
 0xabd   :  { %802 = vadd.xlane.f32.xlu0 %v801_v34 }
 0xabe   :  { %1587 = vpow2.f32 %v1379_v32  ;;  %v1380_v36 = vmul.f32 -1.442695, %v1172_v33  ;;  %v804_v37 = vsel %vm287_vm2, %v800_v35, 0.0  ;;  %v1263_v33 = vld [vmem:[%s2191_s10 + $0x5] ss:$0 sm:$0xff] }
 0xabf   :  { %805 = vadd.xlane.f32.xlu1 %v804_v37  ;;  %v1264_v35 = vld [vmem:[%s2191_s10 + $0x6] ss:$0 sm:$0xff] }
 0xac0   :  { %1589 = vpow2.f32 %v1380_v36 }
 0xac8   :  { %v1588_v38 = vpop.eup %1587 }
 0xac9   :  { %v1179_v39 = vadd.f32 1.0, %v1588_v38 }
 0xaca   :  { %v1590_v40 = vpop.eup %1589 }
 0xacb   :  { %1591 = vrcp.f32 %v1179_v39  ;;  %v1180_v41 = vadd.f32 1.0, %v1590_v40 }
 0xacd   :  { %1593 = vrcp.f32 %v1180_v41 }
 0xad5   :  { %v1592_v42 = vpop.eup %1591 }
 0xad6   :  { %1189 = vperm.xlu0 %1525, %v1592_v42  }
 0xad7   :  { %v1594_v43 = vpop.eup %1593 }
 0xad8   :  { %1194 = vperm.xlu1 %1526, %v1594_v43  }
 0xb4a   :  { %v803_v46 = vpop.xlane.xlu0 %802 }
 0xb4b   :  { %v807_v47 = vmul.f32 0.03125, %v803_v46 }
 0xb4c   :  { %v806_v50 = vpop.xlane.xlu1 %805 }
 0xb4d   :  { %v809_v51 = vadd.f32 1e-05, %v807_v47  ;;  %v808_v52 = vmul.f32 0.03125, %v806_v50 }
 0xb4f   :  { %1595 = vrsqrt.f32 %v809_v51  ;;  %v810_v53 = vadd.f32 1e-05, %v808_v52 }
 0xb51   :  { %1597 = vrsqrt.f32 %v810_v53 }
 0xb55   :  { %v1190_v10 = vpop.permute.xlu0 %1189 }
 0xb57   :  { %v1195_v3 = vpop.permute.xlu1 %1194 }
 0xb59   :  { %v1596_v54 = vpop.eup %1595 }
 0xb5a   :  { %v813_v56 = vmul.f32 %v1596_v54, %v797_v27 }
 0xb5b   :  { %v1598_v57 = vpop.eup %1597 }
 0xb5c   :  { %v815_v58 = vmul.f32 %v813_v56, %v787_v55  ;;  %v814_v59 = vmul.f32 %v1598_v57, %v798_v29 }
 0xb5e   :  { %v817_v60 = vadd.f32 %v815_v58, %v788_v0  ;;  %v816_v61 = vmul.f32 %v814_v59, %v787_v55 }
 0xb60   :  { %v1185_v62 = vsub.f32 %v817_v60, %v1955_v13  ;;  %v818_v63 = vadd.f32 %v816_v61, %v788_v0 }
 0xb62   :  { %v1197_v1 = vmul.f32 %v1190_v10, %v1185_v62  ;;  %v1186_v2 = vsub.f32 %v818_v63, %v1957_v14 }
 0xb64   :  { %v1198_v4 = vmul.f32 %v1195_v3, %v1186_v2  ;;  %v1199_v5 = vadd.f32 %v1197_v1, %v1955_v13 }
 0xb66   :  { %v1200_v16 = vadd.f32 %v1198_v4, %v1957_v14 }
 0xb68   :  { %v1201_v6 = vpack.c.bf16 %v1200_v16, %v1199_v5 }
 0xb6a   :  { %1498 = vmatmul.mubr.msk.bf16.vlgmr.msra.gmra.mrb[16].mxu0 %vm287_vm2, %v1201_v6 }
 0xc3d   :  { %v1256_v8 = vpop.f32.mrb[16].mxu0 }
 0xc3e   :  { %v1257_v9 = vadd.f32 %v1256_v8, %v1206_v7  ;;  %v1499_v11 = vpop.f32.mrb[17].mxu0 }
 0xc3f   :  { %v1259_v12 = vpop.f32.mrb[18].mxu0 }
 0xc40   :  { %v1260_v15 = vadd.f32 %v1259_v12, %v1206_v7  ;;  %v1500_v17 = vpop.f32.mrb[19].mxu0  ;;  %v1265_v18 = vsel %vm287_vm2, %v1257_v9, 0.0 }
 0xc41   :  { %1266 = vadd.xlane.f32.xlu1 %v1265_v18 }
 0xc42   :  { %v1268_v13 = vsel %vm287_vm2, %v1260_v15, 0.0 }
 0xc43   :  { %1269 = vadd.xlane.f32.xlu0 %v1268_v13 }
 0xcce   :  { %v1267_v14 = vpop.xlane.xlu1 %1266 }
 0xccf   :  { %v1271_v19 = vmul.f32 0.03125, %v1267_v14 }
 0xcd0   :  { %v1270_v20 = vpop.xlane.xlu0 %1269 }
 0xcd1   :  { %v1273_v21 = vsub.f32 %v1257_v9, %v1271_v19  ;;  %v1272_v22 = vmul.f32 0.03125, %v1270_v20 }
 0xcd3   :  { %v1274_v23 = vsub.f32 %v1260_v15, %v1272_v22  ;;  %v1275_v24 = vmul.f32 %v1273_v21, %v1273_v21 }
 0xcd5   :  { %v1277_v25 = vsel %vm287_vm2, %v1275_v24, 0.0  ;;  %v1276_v26 = vmul.f32 %v1274_v23, %v1274_v23 }
 0xcd6   :  { %1278 = vadd.xlane.f32.xlu1 %v1277_v25 }
 0xcd7   :  { %v1280_v27 = vsel %vm287_vm2, %v1276_v26, 0.0 }
 0xcda   :  { %1281 = vadd.xlane.f32.xlu1 %v1280_v27 }
 0xd63   :  { %v1279_v28 = vpop.xlane.xlu1 %1278 }
 0xd64   :  { %v1283_v48 = vmul.f32 0.03125, %v1279_v28 }
 0xd66   :  { %v1285_v29 = vadd.f32 1e-05, %v1283_v48 }
 0xd67   :  { %v1282_v30 = vpop.xlane.xlu1 %1281 }
 0xd68   :  { %1599 = vrsqrt.f32 %v1285_v29  ;;  %v1284_v31 = vmul.f32 0.03125, %v1282_v30 }
 0xd6a   :  { %v1286_v49 = vadd.f32 1e-05, %v1284_v31 }
 0xd6c   :  { %1601 = vrsqrt.f32 %v1286_v49 }
 0xd72   :  { %v1600_v32 = vpop.eup %1599 }
 0xd73   :  { %v1289_v34 = vmul.f32 %v1600_v32, %v1273_v21 }
 0xd75   :  { %v1291_v36 = vmul.f32 %v1289_v34, %v1263_v33 }
 0xd76   :  { %v1602_v37 = vpop.eup %1601 }
 0xd77   :  { %v1290_v38 = vmul.f32 %v1602_v37, %v1274_v23  ;;  %v1293_v39 = vadd.f32 %v1291_v36, %v1264_v35 }
 0xd79   :  { %v1292_v40 = vmul.f32 %v1290_v38, %v1263_v33  ;;  %v1295_v41 = vmax.f32 %v1293_v39, 0.0 }
 0xd7b   :  { %v1294_v42 = vadd.f32 %v1292_v40, %v1264_v35  ;;  %1297 = vst.msk [vmem:[#allocation13] sm:$0xff] %vm287_vm2, %v1295_v41 }
 0xd7d   :  { %v1296_v43 = vmax.f32 %v1294_v42, 0.0 }
 0xd7f   :  { %1298 = vst.msk [vmem:[#allocation13 + $0x8] sm:$0xff] %vm287_vm2, %v1296_v43 }
 0xd80   :  { %1746 = shalt.err (!%p1743_p10)
}
 0xd81   :  { %s1747_s0 = scalar_lea.hbm %s2192_s11, 256 }
 0xd82   :  { %p1748_p11 = scmp.ne.s32.totalorder %s2192_s11, %s1747_s0  ;;  %p1751_p12 = scmp.lt.u32.totalorder %s1747_s0, %s2192_s11 }
 0xd84   :  { %p1753_p13 = pnand %p1751_p12, %p1748_p11 }
 0xd86   :  { %1756 = shalt.err (!%p1753_p13)
}
 0xd87   :  { %1310 = dma.vmem_to_hbm [thread:$0]  %s1305_s12, 256, %s2192_s11, [#allocation4], %s1768_s27, %s1768_s27, %s1769_s28  }
 0xd88   :  { %1765 = dma.done.wait [#allocation4], 256  }
 0xd89   :  { %1766 = vsyncadd [#allocation4], 4294967040 }
 0xd8a   :  { %1314 = vsyncpa [#allocation3], 1 }
 0xd8b   :  { %1315 = vsyncpa [#allocation6], 1 }
 0xd8c   :  { %1316 = vsyncpa [#allocation9], 1 }
 0xd8d   :  { %1317 = vsyncpa [#allocation12], 1 }
 0xd8e   :  { %1318 = vsyncpa [#allocation4], 1 }

</bundles_post_ra>
